<compile_context>
chip_gen: v5e
topology: v5e:2x2
jax: 0.10.0
libtpu: 0.0.40
codegen_flags: <defaults>
</compile_context>

<pallas_src>
import random

import jax
import jax.numpy as jnp
from jax import lax
from jax.experimental import pallas as pl
from jax.experimental.pallas import tpu as pltpu

# ---------------- hyper-parameters (small, consistent with the module) ----------------
BATCH = 1          # see fidelity note above
CIN = 4            # input image channels
H = W = 16         # spatial
ENC_HID = 32
DENC = 2 * ENC_HID  # encoder feature dim (= conv out channels) = 64
EMB = 32
DEC_HID = 32
VOCAB = 16         # output_dim
VOCAB_PAD = 128    # lane-dense padded vocab
SRC_LEN = H        # encoder sequence length (mean over width -> one step per row)
TRG_LEN = 6
N_STEPS = TRG_LEN - 1
KSZ = 3
PATCH = CIN * KSZ * KSZ              # 36
PACK_K = VOCAB + DENC + DEC_HID      # 112: [onehot ; weighted ; hidden] packed K dim
NEG = -1.0e30                        # pad bias so argmax never picks a padded lane


# ------------------------------- fused seq2seq kernel ----------------------------------
def fused_kernel(tgt_ref, tf_ref,                              # scalar prefetch (SMEM)
                 patches_ref, wcol_ref, cb_ref, pool_ref,      # CNN encoder inputs
                 wa_e_ref, wa_h_ref, ba_ref, v_ref,            # attention
                 w_lstm_ref, b_lstm_ref, w_fc_ref, b_fc_ref,   # packed (emb-folded) weights
                 pred_ref):                                    # output (N_STEPS, VOCAB_PAD)
    lane = lax.broadcasted_iota(jnp.int32, (1, VOCAB_PAD), 1)
    vlane = lax.broadcasted_iota(jnp.int32, (1, VOCAB), 1)
    D = DEC_HID

    # ---- CNN encoder (runs once) ----
    y = jnp.dot(patches_ref[...], wcol_ref[...],
                preferred_element_type=jnp.float32) + cb_ref[...]
    y = jnp.maximum(y, 0.0)                                      # ReLU
    # mean over width as a matmul with a pooling matrix (stays on the MXU)
    enc = jnp.dot(pool_ref[...], y, preferred_element_type=jnp.float32)   # (S, DENC)

    # ---- hoisted encoder-side attention projection (constant across decode steps) ----
    enc_proj = (jnp.dot(enc, wa_e_ref[...], preferred_element_type=jnp.float32)
                + ba_ref[...])                                   # (S, DEC_HID)

    # loop-invariant weights held as values (vreg / VMEM resident)
    wa_h = wa_h_ref[...]
    v_row = v_ref[...]                 # (1, DEC_HID), lane-major
    w_lstm = w_lstm_ref[...]           # (PACK_K, 4*DEC_HID) bf16, emb folded in
    b_lstm = b_lstm_ref[...]           # (1, 4*DEC_HID) f32
    w_fc = w_fc_ref[...]               # (PACK_K, VOCAB_PAD) bf16, emb folded in
    b_fc = b_fc_ref[...]               # (1, VOCAB_PAD) f32, NEG on padded lanes

    # ---- decode recurrence: fully unrolled, state carried in vregs ----
    onehot = (vlane == tgt_ref[0]).astype(jnp.float32)           # input = target[:, 0]
    h = jnp.zeros((1, DEC_HID), jnp.float32)
    c = jnp.zeros((1, DEC_HID), jnp.float32)

    for t in range(N_STEPS):
        # Bahdanau attention: softmax_s( v . tanh(enc_proj_s + h @ Wa_h) ), lane-major
        energy = jnp.tanh(enc_proj
                          + jnp.dot(h, wa_h, preferred_element_type=jnp.float32))  # (S, D)
        scores = lax.dot_general(v_row, energy, (((1,), (1,)), ((), ())),
                                 preferred_element_type=jnp.float32)               # (1, S)
        scores = scores - jnp.max(scores, axis=-1, keepdims=True)
        e = jnp.exp(scores)
        a = e / jnp.sum(e, axis=-1, keepdims=True)               # exact softmax (1, S)
        weighted = jnp.dot(a, enc, preferred_element_type=jnp.float32)   # (1, DENC)

        # LSTM cell: single packed (1,112) x (112,128) bf16 MXU push (emb folded)
        x_cat = jnp.concatenate([onehot, weighted, h], axis=1).astype(jnp.bfloat16)
        gates = (jnp.dot(x_cat, w_lstm, preferred_element_type=jnp.float32)
                 + b_lstm)                                       # (1, 4*DEC_HID)
        sig = jax.nn.sigmoid(gates)                              # full-width EUP push
        th = jnp.tanh(gates)                                     # full-width EUP push
        i_g = sig[:, 0:D]
        f_g = sig[:, D:2 * D]
        g_g = th[:, 2 * D:3 * D]
        o_g = sig[:, 3 * D:4 * D]
        c = f_g * c + i_g * g_g
        h = o_g * jnp.tanh(c)

        # fc_out on cat(embedded, hidden, weighted); packed to [onehot, weighted, h]
        x_fc = jnp.concatenate([onehot, weighted, h], axis=1).astype(jnp.bfloat16)
        pred = (jnp.dot(x_fc, w_fc, preferred_element_type=jnp.float32)
                + b_fc)                                          # (1, VOCAB_PAD)

        pred_ref[pl.ds(t, 1), :] = pred                          # static-index row store

        # next-token selection (argmax vs teacher forcing); skip on last step
        if t < N_STEPS - 1:
            m = jnp.max(pred, axis=-1, keepdims=True)
            first_idx = jnp.min(jnp.where(pred >= m, lane, VOCAB_PAD),
                                axis=-1, keepdims=True)          # first argmax (tie-break)
            onehot_top1 = (vlane == first_idx).astype(jnp.float32)
            onehot_tgt = (vlane == tgt_ref[t + 1]).astype(jnp.float32)
            use_teacher = tf_ref[t] != 0
            onehot = jnp.where(use_teacher, onehot_tgt, onehot_top1)


# ------------------------------------ wrapper -------------------------------------------
def _im2col(x_nchw):
    B, C, Hh, Ww = x_nchw.shape
    xp = jnp.pad(x_nchw, ((0, 0), (0, 0), (1, 1), (1, 1)))
    cols = []
    for dh in range(KSZ):
        for dw in range(KSZ):
            cols.append(xp[:, :, dh:dh + Hh, dw:dw + Ww])        # (B, C, H, W)
    patches = jnp.stack(cols, axis=-1)                           # (B, C, H, W, 9)
    return patches.transpose(0, 2, 3, 1, 4).reshape(B, Hh * Ww, C * KSZ * KSZ)


@jax.jit
def seq2seq_forward(params, x, target, tf_mask):
    # --- encoder inputs (im2col + pooling matrix), computed once, consumed at step 0 ---
    patches = _im2col(x)[0]                                      # (H*W, PATCH)
    wcol = params["conv_w"].reshape(DENC, PATCH).T               # (PATCH, DENC)
    cb = params["conv_b"].reshape(1, DENC)
    rows = jnp.arange(SRC_LEN)[:, None]
    cols_idx = jnp.arange(H * W)[None, :]
    pool = ((cols_idx // W) == rows).astype(jnp.float32) / float(W)   # (SRC_LEN, H*W)

    # --- pack decoder weights, folding the embedding table in (onehot -> no emb matmul) ---
    emb = params["emb_table"]                                    # (VOCAB, EMB)
    # LSTM input is cat(embedded, weighted); hidden uses whh.  x layout: [onehot,w,h]
    w_lstm = jnp.concatenate([emb @ params["wih_e"],             # (VOCAB, 4D)
                              params["wih_w"],                   # (DENC, 4D)
                              params["whh"]], axis=0)            # (DEC_HID,4D) -> (PACK_K,4D)
    # fc_out on cat(embedded, hidden, weighted); reordered to x layout [onehot, w, h]
    w_fc = jnp.concatenate([emb @ params["wfc_e"],               # (VOCAB, V)
                            params["wfc_w"],                     # (DENC, V)
                            params["wfc_h"]], axis=0)            # (DEC_HID,V) -> (PACK_K,V)
    w_fc_pad = jnp.zeros((PACK_K, VOCAB_PAD), jnp.float32).at[:, :VOCAB].set(w_fc)
    b_fc_pad = jnp.full((1, VOCAB_PAD), NEG, jnp.float32).at[:, :VOCAB].set(params["bfc"])

    # bf16 operands for the per-step packed MXU dots (f32 accumulation in-kernel)
    w_lstm_bf = w_lstm.astype(jnp.bfloat16)
    w_fc_bf = w_fc_pad.astype(jnp.bfloat16)

    v_row = params["v"].T                                        # (1, DEC_HID) lane-major

    tgt = target[0].astype(jnp.int32)                            # (TRG_LEN,)
    tf_i = tf_mask.astype(jnp.int32)                             # (TRG_LEN - 1,)

    preds = pl.pallas_call(
        fused_kernel,
        out_shape=jax.ShapeDtypeStruct((N_STEPS, VOCAB_PAD), jnp.float32),
        grid_spec=pltpu.PrefetchScalarGridSpec(
            num_scalar_prefetch=2,
            grid=(1,),
            in_specs=[
                pl.BlockSpec((H * W, PATCH), lambda i, tgt, tf: (0, 0)),
                pl.BlockSpec((PATCH, DENC), lambda i, tgt, tf: (0, 0)),
                pl.BlockSpec((1, DENC), lambda i, tgt, tf: (0, 0)),
                pl.BlockSpec((SRC_LEN, H * W), lambda i, tgt, tf: (0, 0)),
                pl.BlockSpec((DENC, DEC_HID), lambda i, tgt, tf: (0, 0)),
                pl.BlockSpec((DEC_HID, DEC_HID), lambda i, tgt, tf: (0, 0)),
                pl.BlockSpec((1, DEC_HID), lambda i, tgt, tf: (0, 0)),
                pl.BlockSpec((1, DEC_HID), lambda i, tgt, tf: (0, 0)),
                pl.BlockSpec((PACK_K, 4 * DEC_HID), lambda i, tgt, tf: (0, 0)),
                pl.BlockSpec((1, 4 * DEC_HID), lambda i, tgt, tf: (0, 0)),
                pl.BlockSpec((PACK_K, VOCAB_PAD), lambda i, tgt, tf: (0, 0)),
                pl.BlockSpec((1, VOCAB_PAD), lambda i, tgt, tf: (0, 0)),
            ],
            out_specs=pl.BlockSpec((N_STEPS, VOCAB_PAD), lambda i, tgt, tf: (0, 0)),
            scratch_shapes=[],
        ),
        compiler_params=pltpu.CompilerParams(dimension_semantics=("arbitrary",)),
    )(tgt, tf_i, patches, wcol, cb, pool,
      params["wa_e"], params["wa_h"], params["ba"], v_row,
      w_lstm_bf, params["b_lstm"], w_fc_bf, b_fc_pad)

    outputs = jnp.zeros((BATCH, TRG_LEN, VOCAB), jnp.float32)
    outputs = outputs.at[0, 1:, :].set(preds[:, :VOCAB])         # outputs[:,0,:] stays 0
    return outputs


# ----------------------------------- parameters ----------------------------------------
def init_params(key):
    ks = jax.random.split(key, 16)
    s = 0.1
    return {
        # CNN encoder
        "conv_w": s * jax.random.normal(ks[0], (DENC, CIN, KSZ, KSZ), jnp.float32),
        "conv_b": s * jax.random.normal(ks[1], (DENC,), jnp.float32),
        # Attention: Linear(DENC + DEC_HID -> DEC_HID) split by [hidden ; enc], v: DEC_HID -> 1
        "wa_h": s * jax.random.normal(ks[2], (DEC_HID, DEC_HID), jnp.float32),
        "wa_e": s * jax.random.normal(ks[3], (DENC, DEC_HID), jnp.float32),
        "ba":  s * jax.random.normal(ks[4], (1, DEC_HID), jnp.float32),
        "v":   s * jax.random.normal(ks[5], (DEC_HID, 1), jnp.float32),
        # Decoder embedding
        "emb_table": s * jax.random.normal(ks[6], (VOCAB, EMB), jnp.float32),
        # LSTM(EMB + DENC -> DEC_HID), weights split by the [emb ; weighted] concat
        "wih_e": s * jax.random.normal(ks[7], (EMB, 4 * DEC_HID), jnp.float32),
        "wih_w": s * jax.random.normal(ks[8], (DENC, 4 * DEC_HID), jnp.float32),
        "whh":   s * jax.random.normal(ks[9], (DEC_HID, 4 * DEC_HID), jnp.float32),
        "b_lstm": (s * jax.random.normal(ks[10], (1, 4 * DEC_HID), jnp.float32)
                   + s * jax.random.normal(ks[11], (1, 4 * DEC_HID), jnp.float32)),  # b_ih + b_hh
        # fc_out(EMB + DEC_HID + DENC -> VOCAB), split by cat(embedded, hidden, weighted)
        "wfc_e": s * jax.random.normal(ks[12], (EMB, VOCAB), jnp.float32),
        "wfc_h": s * jax.random.normal(ks[13], (DEC_HID, VOCAB), jnp.float32),
        "wfc_w": s * jax.random.normal(ks[14], (DENC, VOCAB), jnp.float32),
        "bfc":   s * jax.random.normal(ks[15], (1, VOCAB), jnp.float32),
    }


if __name__ == "__main__":
    random.seed(0)  # deterministic teacher forcing, sampled eagerly like the reference
    key = jax.random.PRNGKey(0)
    kp, kx, kt = jax.random.split(key, 3)

    params = init_params(kp)
    x = jax.random.normal(kx, (BATCH, CIN, H, W), jnp.float32)          # NCHW input
    target = jax.random.randint(kt, (BATCH, TRG_LEN), 0, VOCAB, jnp.int32)
    teacher_forcing_ratio = 0.5
    tf_mask = jnp.array([1 if random.random() < teacher_forcing_ratio else 0
                         for _ in range(TRG_LEN - 1)], dtype=jnp.int32)

    outputs = seq2seq_forward(params, x, target, tf_mask)
    outputs = jax.block_until_ready(outputs)
    assert outputs.shape == (BATCH, TRG_LEN, VOCAB)
    assert bool(jnp.all(jnp.isfinite(outputs)))
    print("KERNEL_OK")
</pallas_src>

<mosaic_0001>
module attributes {stable_mosaic.version = 11 : i64} {
  func.func @fused_kernel(%arg0: i32, %arg1: memref<6xi32, #tpu.memory_space<smem>>, %arg2: memref<5xi32, #tpu.memory_space<smem>>, %arg3: memref<256x36xf32, #tpu.memory_space<vmem>>, %arg4: memref<36x64xf32, #tpu.memory_space<vmem>>, %arg5: memref<1x64xf32, #tpu.memory_space<vmem>>, %arg6: memref<16x256xf32, #tpu.memory_space<vmem>>, %arg7: memref<64x32xf32, #tpu.memory_space<vmem>>, %arg8: memref<32x32xf32, #tpu.memory_space<vmem>>, %arg9: memref<1x32xf32, #tpu.memory_space<vmem>>, %arg10: memref<1x32xf32, #tpu.memory_space<vmem>>, %arg11: memref<112x128xbf16, #tpu.memory_space<vmem>>, %arg12: memref<1x128xf32, #tpu.memory_space<vmem>>, %arg13: memref<112x128xbf16, #tpu.memory_space<vmem>>, %arg14: memref<1x128xf32, #tpu.memory_space<vmem>>, %arg15: memref<5x128xf32, #tpu.memory_space<vmem>>) attributes {dimension_semantics = [#tpu.dimension_semantics<arbitrary>], iteration_bounds = array<i64: 1>, scalar_prefetch = 2 : i64, scratch_operands = 0 : i64, tpu.core_type = #tpu.core_type<tc>, window_params = [{pipeline_mode = #tpu.pipeline_mode<synchronous>, transform_indices = @transform_0, window_bounds = array<i64: 256, 36>}, {pipeline_mode = #tpu.pipeline_mode<synchronous>, transform_indices = @transform_1, window_bounds = array<i64: 36, 64>}, {pipeline_mode = #tpu.pipeline_mode<synchronous>, transform_indices = @transform_2, window_bounds = array<i64: 1, 64>}, {pipeline_mode = #tpu.pipeline_mode<synchronous>, transform_indices = @transform_3, window_bounds = array<i64: 16, 256>}, {pipeline_mode = #tpu.pipeline_mode<synchronous>, transform_indices = @transform_4, window_bounds = array<i64: 64, 32>}, {pipeline_mode = #tpu.pipeline_mode<synchronous>, transform_indices = @transform_5, window_bounds = array<i64: 32, 32>}, {pipeline_mode = #tpu.pipeline_mode<synchronous>, transform_indices = @transform_6, window_bounds = array<i64: 1, 32>}, {pipeline_mode = #tpu.pipeline_mode<synchronous>, transform_indices = @transform_7, window_bounds = array<i64: 1, 32>}, {pipeline_mode = #tpu.pipeline_mode<synchronous>, transform_indices = @transform_8, window_bounds = array<i64: 112, 128>}, {pipeline_mode = #tpu.pipeline_mode<synchronous>, transform_indices = @transform_9, window_bounds = array<i64: 1, 128>}, {pipeline_mode = #tpu.pipeline_mode<synchronous>, transform_indices = @transform_10, window_bounds = array<i64: 112, 128>}, {pipeline_mode = #tpu.pipeline_mode<synchronous>, transform_indices = @transform_11, window_bounds = array<i64: 1, 128>}, {pipeline_mode = #tpu.pipeline_mode<synchronous>, transform_indices = @transform_12, window_bounds = array<i64: 5, 128>}]} {
    %0 = tpu.iota {dimensions = array<i32: 1>} : vector<1x128xi32>
    %1 = tpu.iota {dimensions = array<i32: 1>} : vector<1x16xi32>
    %c0 = arith.constant 0 : index
    %c0_0 = arith.constant 0 : index
    %2 = vector.load %arg3[%c0, %c0_0] : memref<256x36xf32, #tpu.memory_space<vmem>>, vector<256x36xf32>
    %c0_1 = arith.constant 0 : index
    %c0_2 = arith.constant 0 : index
    %3 = vector.load %arg4[%c0_1, %c0_2] : memref<36x64xf32, #tpu.memory_space<vmem>>, vector<36x64xf32>
    %cst = arith.constant dense<0.000000e+00> : vector<256x64xf32>
    %4 = tpu.matmul %2, %3, %cst {dimension_numbers = #tpu.dot_dimension_numbers<[1], [0], [0], [1], [0, 0, 1, 1], [], []>} : vector<256x36xf32>, vector<36x64xf32>, vector<256x64xf32> -> vector<256x64xf32>
    %c0_3 = arith.constant 0 : index
    %c0_4 = arith.constant 0 : index
    %5 = vector.load %arg5[%c0_3, %c0_4] : memref<1x64xf32, #tpu.memory_space<vmem>>, vector<1x64xf32>
    %6 = vector.broadcast %5 : vector<1x64xf32> to vector<256x64xf32>
    %7 = arith.addf %4, %6 : vector<256x64xf32>
    %cst_5 = arith.constant 0.000000e+00 : f32
    %8 = vector.broadcast %cst_5 : f32 to vector<256x64xf32>
    %9 = arith.maximumf %7, %8 : vector<256x64xf32>
    %c0_6 = arith.constant 0 : index
    %c0_7 = arith.constant 0 : index
    %10 = vector.load %arg6[%c0_6, %c0_7] : memref<16x256xf32, #tpu.memory_space<vmem>>, vector<16x256xf32>
    %cst_8 = arith.constant dense<0.000000e+00> : vector<16x64xf32>
    %11 = tpu.matmul %10, %9, %cst_8 {dimension_numbers = #tpu.dot_dimension_numbers<[1], [0], [0], [1], [0, 0, 1, 1], [], []>} : vector<16x256xf32>, vector<256x64xf32>, vector<16x64xf32> -> vector<16x64xf32>
    %c0_9 = arith.constant 0 : index
    %c0_10 = arith.constant 0 : index
    %12 = vector.load %arg7[%c0_9, %c0_10] : memref<64x32xf32, #tpu.memory_space<vmem>>, vector<64x32xf32>
    %cst_11 = arith.constant dense<0.000000e+00> : vector<16x32xf32>
    %13 = tpu.matmul %11, %12, %cst_11 {dimension_numbers = #tpu.dot_dimension_numbers<[1], [0], [0], [1], [0, 0, 1, 1], [], []>} : vector<16x64xf32>, vector<64x32xf32>, vector<16x32xf32> -> vector<16x32xf32>
    %c0_12 = arith.constant 0 : index
    %c0_13 = arith.constant 0 : index
    %14 = vector.load %arg9[%c0_12, %c0_13] : memref<1x32xf32, #tpu.memory_space<vmem>>, vector<1x32xf32>
    %15 = vector.broadcast %14 : vector<1x32xf32> to vector<16x32xf32>
    %16 = arith.addf %13, %15 : vector<16x32xf32>
    %c0_14 = arith.constant 0 : index
    %c0_15 = arith.constant 0 : index
    %17 = vector.load %arg8[%c0_14, %c0_15] : memref<32x32xf32, #tpu.memory_space<vmem>>, vector<32x32xf32>
    %c0_16 = arith.constant 0 : index
    %c0_17 = arith.constant 0 : index
    %18 = vector.load %arg10[%c0_16, %c0_17] : memref<1x32xf32, #tpu.memory_space<vmem>>, vector<1x32xf32>
    %c0_18 = arith.constant 0 : index
    %c0_19 = arith.constant 0 : index
    %19 = vector.load %arg11[%c0_18, %c0_19] : memref<112x128xbf16, #tpu.memory_space<vmem>>, vector<112x128xbf16>
    %c0_20 = arith.constant 0 : index
    %c0_21 = arith.constant 0 : index
    %20 = vector.load %arg12[%c0_20, %c0_21] : memref<1x128xf32, #tpu.memory_space<vmem>>, vector<1x128xf32>
    %c0_22 = arith.constant 0 : index
    %c0_23 = arith.constant 0 : index
    %21 = vector.load %arg13[%c0_22, %c0_23] : memref<112x128xbf16, #tpu.memory_space<vmem>>, vector<112x128xbf16>
    %c0_24 = arith.constant 0 : index
    %c0_25 = arith.constant 0 : index
    %22 = vector.load %arg14[%c0_24, %c0_25] : memref<1x128xf32, #tpu.memory_space<vmem>>, vector<1x128xf32>
    %c0_26 = arith.constant 0 : index
    %23 = memref.load %arg1[%c0_26] : memref<6xi32, #tpu.memory_space<smem>>
    %24 = vector.broadcast %23 : i32 to vector<1x16xi32>
    %25 = arith.cmpi eq, %1, %24 : vector<1x16xi32>
    %26 = arith.extui %25 : vector<1x16xi1> to vector<1x16xi32>
    %27 = arith.sitofp %26 : vector<1x16xi32> to vector<1x16xf32>
    %cst_27 = arith.constant 0.000000e+00 : f32
    %28 = vector.broadcast %cst_27 : f32 to vector<1x32xf32>
    %cst_28 = arith.constant 0.000000e+00 : f32
    %29 = vector.broadcast %cst_28 : f32 to vector<1x32xf32>
    %cst_29 = arith.constant dense<0.000000e+00> : vector<1x32xf32>
    %30 = tpu.matmul %28, %17, %cst_29 {dimension_numbers = #tpu.dot_dimension_numbers<[1], [0], [0], [1], [0, 0, 1, 1], [], []>} : vector<1x32xf32>, vector<32x32xf32>, vector<1x32xf32> -> vector<1x32xf32>
    %31 = vector.broadcast %30 : vector<1x32xf32> to vector<16x32xf32>
    %32 = arith.addf %16, %31 : vector<16x32xf32>
    %33 = math.tanh %32 : vector<16x32xf32>
    %cst_30 = arith.constant dense<0.000000e+00> : vector<1x16xf32>
    %34 = tpu.matmul %18, %33, %cst_30 {dimension_numbers = #tpu.dot_dimension_numbers<[1], [1], [0], [0], [0, 0, 1, 0], [], []>} : vector<1x32xf32>, vector<16x32xf32>, vector<1x16xf32> -> vector<1x16xf32>
    %cst_31 = arith.constant dense<0xFF800000> : vector<1xf32>
    %35 = vector.multi_reduction <maximumf>, %34, %cst_31 [1] : vector<1x16xf32> to vector<1xf32>
    %36 = vector.shape_cast %35 : vector<1xf32> to vector<1x1xf32>
    %37 = vector.broadcast %36 : vector<1x1xf32> to vector<1x16xf32>
    %38 = arith.subf %34, %37 : vector<1x16xf32>
    %39 = math.exp %38 : vector<1x16xf32>
    %cst_32 = arith.constant dense<0.000000e+00> : vector<1xf32>
    %40 = vector.multi_reduction <add>, %39, %cst_32 [1] : vector<1x16xf32> to vector<1xf32>
    %41 = vector.shape_cast %40 : vector<1xf32> to vector<1x1xf32>
    %42 = vector.broadcast %41 : vector<1x1xf32> to vector<1x16xf32>
    %43 = arith.divf %39, %42 : vector<1x16xf32>
    %cst_33 = arith.constant dense<0.000000e+00> : vector<1x64xf32>
    %44 = tpu.matmul %43, %11, %cst_33 {dimension_numbers = #tpu.dot_dimension_numbers<[1], [0], [0], [1], [0, 0, 1, 1], [], []>} : vector<1x16xf32>, vector<16x64xf32>, vector<1x64xf32> -> vector<1x64xf32>
    %45 = tpu.concatenate %27, %44, %28 in 1 : vector<1x16xf32>, vector<1x64xf32>, vector<1x32xf32> -> vector<1x112xf32>
    %46 = arith.truncf %45 : vector<1x112xf32> to vector<1x112xbf16>
    %cst_34 = arith.constant dense<0.000000e+00> : vector<1x128xf32>
    %47 = tpu.matmul %46, %19, %cst_34 {dimension_numbers = #tpu.dot_dimension_numbers<[1], [0], [0], [1], [0, 0, 1, 1], [], []>} : vector<1x112xbf16>, vector<112x128xbf16>, vector<1x128xf32> -> vector<1x128xf32>
    %48 = arith.addf %47, %20 : vector<1x128xf32>
    %49 = arith.negf %48 : vector<1x128xf32>
    %50 = math.exp %49 : vector<1x128xf32>
    %cst_35 = arith.constant 1.000000e+00 : f32
    %51 = vector.broadcast %cst_35 : f32 to vector<1x128xf32>
    %52 = arith.addf %51, %50 : vector<1x128xf32>
    %53 = arith.divf %51, %52 : vector<1x128xf32>
    %54 = math.tanh %48 : vector<1x128xf32>
    %55 = vector.extract_strided_slice %53 {offsets = [0, 0], sizes = [1, 32], strides = [1, 1]} : vector<1x128xf32> to vector<1x32xf32>
    %56 = vector.extract_strided_slice %53 {offsets = [0, 32], sizes = [1, 32], strides = [1, 1]} : vector<1x128xf32> to vector<1x32xf32>
    %57 = vector.extract_strided_slice %54 {offsets = [0, 64], sizes = [1, 32], strides = [1, 1]} : vector<1x128xf32> to vector<1x32xf32>
    %58 = vector.extract_strided_slice %53 {offsets = [0, 96], sizes = [1, 32], strides = [1, 1]} : vector<1x128xf32> to vector<1x32xf32>
    %59 = arith.mulf %56, %29 : vector<1x32xf32>
    %60 = arith.mulf %55, %57 : vector<1x32xf32>
    %61 = arith.addf %59, %60 : vector<1x32xf32>
    %62 = math.tanh %61 : vector<1x32xf32>
    %63 = arith.mulf %58, %62 : vector<1x32xf32>
    %64 = tpu.concatenate %27, %44, %63 in 1 : vector<1x16xf32>, vector<1x64xf32>, vector<1x32xf32> -> vector<1x112xf32>
    %65 = arith.truncf %64 : vector<1x112xf32> to vector<1x112xbf16>
    %cst_36 = arith.constant dense<0.000000e+00> : vector<1x128xf32>
    %66 = tpu.matmul %65, %21, %cst_36 {dimension_numbers = #tpu.dot_dimension_numbers<[1], [0], [0], [1], [0, 0, 1, 1], [], []>} : vector<1x112xbf16>, vector<112x128xbf16>, vector<1x128xf32> -> vector<1x128xf32>
    %67 = arith.addf %66, %22 : vector<1x128xf32>
    %c0_37 = arith.constant 0 : index
    %c0_38 = arith.constant 0 : index
    %68 = vector.load %arg15[%c0_37, %c0_38] : memref<5x128xf32, #tpu.memory_space<vmem>>, vector<1x128xf32>
    tpu.vector_store %arg15[%c0_37, %c0_38], %67 {strides = array<i32>} : memref<5x128xf32, #tpu.memory_space<vmem>>, vector<1x128xf32>,
    %cst_39 = arith.constant dense<0xFF800000> : vector<1xf32>
    %69 = vector.multi_reduction <maximumf>, %67, %cst_39 [1] : vector<1x128xf32> to vector<1xf32>
    %70 = vector.shape_cast %69 : vector<1xf32> to vector<1x1xf32>
    %71 = vector.broadcast %70 : vector<1x1xf32> to vector<1x128xf32>
    %72 = arith.cmpf oge, %67, %71 : vector<1x128xf32>
    %c128_i32 = arith.constant 128 : i32
    %73 = vector.broadcast %c128_i32 : i32 to vector<1x128xi32>
    %74 = arith.select %72, %0, %73 : vector<1x128xi1>, vector<1x128xi32>
    %cst_40 = arith.constant dense<2147483647> : vector<1xi32>
    %75 = vector.multi_reduction <minsi>, %74, %cst_40 [1] : vector<1x128xi32> to vector<1xi32>
    %76 = vector.shape_cast %75 : vector<1xi32> to vector<1x1xi32>
    %77 = vector.broadcast %76 : vector<1x1xi32> to vector<1x16xi32>
    %78 = arith.cmpi eq, %1, %77 : vector<1x16xi32>
    %79 = arith.extui %78 : vector<1x16xi1> to vector<1x16xi32>
    %80 = arith.sitofp %79 : vector<1x16xi32> to vector<1x16xf32>
    %c1 = arith.constant 1 : index
    %81 = memref.load %arg1[%c1] : memref<6xi32, #tpu.memory_space<smem>>
    %82 = vector.broadcast %81 : i32 to vector<1x16xi32>
    %83 = arith.cmpi eq, %1, %82 : vector<1x16xi32>
    %84 = arith.extui %83 : vector<1x16xi1> to vector<1x16xi32>
    %85 = arith.sitofp %84 : vector<1x16xi32> to vector<1x16xf32>
    %c0_41 = arith.constant 0 : index
    %86 = memref.load %arg2[%c0_41] : memref<5xi32, #tpu.memory_space<smem>>
    %c0_i32 = arith.constant 0 : i32
    %87 = arith.cmpi ne, %86, %c0_i32 : i32
    %88 = arith.select %87, %85, %80 : vector<1x16xf32>
    %cst_42 = arith.constant dense<0.000000e+00> : vector<1x32xf32>
    %89 = tpu.matmul %63, %17, %cst_42 {dimension_numbers = #tpu.dot_dimension_numbers<[1], [0], [0], [1], [0, 0, 1, 1], [], []>} : vector<1x32xf32>, vector<32x32xf32>, vector<1x32xf32> -> vector<1x32xf32>
    %90 = vector.broadcast %89 : vector<1x32xf32> to vector<16x32xf32>
    %91 = arith.addf %16, %90 : vector<16x32xf32>
    %92 = math.tanh %91 : vector<16x32xf32>
    %cst_43 = arith.constant dense<0.000000e+00> : vector<1x16xf32>
    %93 = tpu.matmul %18, %92, %cst_43 {dimension_numbers = #tpu.dot_dimension_numbers<[1], [1], [0], [0], [0, 0, 1, 0], [], []>} : vector<1x32xf32>, vector<16x32xf32>, vector<1x16xf32> -> vector<1x16xf32>
    %cst_44 = arith.constant dense<0xFF800000> : vector<1xf32>
    %94 = vector.multi_reduction <maximumf>, %93, %cst_44 [1] : vector<1x16xf32> to vector<1xf32>
    %95 = vector.shape_cast %94 : vector<1xf32> to vector<1x1xf32>
    %96 = vector.broadcast %95 : vector<1x1xf32> to vector<1x16xf32>
    %97 = arith.subf %93, %96 : vector<1x16xf32>
    %98 = math.exp %97 : vector<1x16xf32>
    %cst_45 = arith.constant dense<0.000000e+00> : vector<1xf32>
    %99 = vector.multi_reduction <add>, %98, %cst_45 [1] : vector<1x16xf32> to vector<1xf32>
    %100 = vector.shape_cast %99 : vector<1xf32> to vector<1x1xf32>
    %101 = vector.broadcast %100 : vector<1x1xf32> to vector<1x16xf32>
    %102 = arith.divf %98, %101 : vector<1x16xf32>
    %cst_46 = arith.constant dense<0.000000e+00> : vector<1x64xf32>
    %103 = tpu.matmul %102, %11, %cst_46 {dimension_numbers = #tpu.dot_dimension_numbers<[1], [0], [0], [1], [0, 0, 1, 1], [], []>} : vector<1x16xf32>, vector<16x64xf32>, vector<1x64xf32> -> vector<1x64xf32>
    %104 = tpu.concatenate %88, %103, %63 in 1 : vector<1x16xf32>, vector<1x64xf32>, vector<1x32xf32> -> vector<1x112xf32>
    %105 = arith.truncf %104 : vector<1x112xf32> to vector<1x112xbf16>
    %cst_47 = arith.constant dense<0.000000e+00> : vector<1x128xf32>
    %106 = tpu.matmul %105, %19, %cst_47 {dimension_numbers = #tpu.dot_dimension_numbers<[1], [0], [0], [1], [0, 0, 1, 1], [], []>} : vector<1x112xbf16>, vector<112x128xbf16>, vector<1x128xf32> -> vector<1x128xf32>
    %107 = arith.addf %106, %20 : vector<1x128xf32>
    %108 = arith.negf %107 : vector<1x128xf32>
    %109 = math.exp %108 : vector<1x128xf32>
    %cst_48 = arith.constant 1.000000e+00 : f32
    %110 = vector.broadcast %cst_48 : f32 to vector<1x128xf32>
    %111 = arith.addf %110, %109 : vector<1x128xf32>
    %112 = arith.divf %110, %111 : vector<1x128xf32>
    %113 = math.tanh %107 : vector<1x128xf32>
    %114 = vector.extract_strided_slice %112 {offsets = [0, 0], sizes = [1, 32], strides = [1, 1]} : vector<1x128xf32> to vector<1x32xf32>
    %115 = vector.extract_strided_slice %112 {offsets = [0, 32], sizes = [1, 32], strides = [1, 1]} : vector<1x128xf32> to vector<1x32xf32>
    %116 = vector.extract_strided_slice %113 {offsets = [0, 64], sizes = [1, 32], strides = [1, 1]} : vector<1x128xf32> to vector<1x32xf32>
    %117 = vector.extract_strided_slice %112 {offsets = [0, 96], sizes = [1, 32], strides = [1, 1]} : vector<1x128xf32> to vector<1x32xf32>
    %118 = arith.mulf %115, %61 : vector<1x32xf32>
    %119 = arith.mulf %114, %116 : vector<1x32xf32>
    %120 = arith.addf %118, %119 : vector<1x32xf32>
    %121 = math.tanh %120 : vector<1x32xf32>
    %122 = arith.mulf %117, %121 : vector<1x32xf32>
    %123 = tpu.concatenate %88, %103, %122 in 1 : vector<1x16xf32>, vector<1x64xf32>, vector<1x32xf32> -> vector<1x112xf32>
    %124 = arith.truncf %123 : vector<1x112xf32> to vector<1x112xbf16>
    %cst_49 = arith.constant dense<0.000000e+00> : vector<1x128xf32>
    %125 = tpu.matmul %124, %21, %cst_49 {dimension_numbers = #tpu.dot_dimension_numbers<[1], [0], [0], [1], [0, 0, 1, 1], [], []>} : vector<1x112xbf16>, vector<112x128xbf16>, vector<1x128xf32> -> vector<1x128xf32>
    %126 = arith.addf %125, %22 : vector<1x128xf32>
    %c1_50 = arith.constant 1 : index
    %c0_51 = arith.constant 0 : index
    %127 = vector.load %arg15[%c1_50, %c0_51] : memref<5x128xf32, #tpu.memory_space<vmem>>, vector<1x128xf32>
    tpu.vector_store %arg15[%c1_50, %c0_51], %126 {strides = array<i32>} : memref<5x128xf32, #tpu.memory_space<vmem>>, vector<1x128xf32>,
    %cst_52 = arith.constant dense<0xFF800000> : vector<1xf32>
    %128 = vector.multi_reduction <maximumf>, %126, %cst_52 [1] : vector<1x128xf32> to vector<1xf32>
    %129 = vector.shape_cast %128 : vector<1xf32> to vector<1x1xf32>
    %130 = vector.broadcast %129 : vector<1x1xf32> to vector<1x128xf32>
    %131 = arith.cmpf oge, %126, %130 : vector<1x128xf32>
    %c128_i32_53 = arith.constant 128 : i32
    %132 = vector.broadcast %c128_i32_53 : i32 to vector<1x128xi32>
    %133 = arith.select %131, %0, %132 : vector<1x128xi1>, vector<1x128xi32>
    %cst_54 = arith.constant dense<2147483647> : vector<1xi32>
    %134 = vector.multi_reduction <minsi>, %133, %cst_54 [1] : vector<1x128xi32> to vector<1xi32>
    %135 = vector.shape_cast %134 : vector<1xi32> to vector<1x1xi32>
    %136 = vector.broadcast %135 : vector<1x1xi32> to vector<1x16xi32>
    %137 = arith.cmpi eq, %1, %136 : vector<1x16xi32>
    %138 = arith.extui %137 : vector<1x16xi1> to vector<1x16xi32>
    %139 = arith.sitofp %138 : vector<1x16xi32> to vector<1x16xf32>
    %c2 = arith.constant 2 : index
    %140 = memref.load %arg1[%c2] : memref<6xi32, #tpu.memory_space<smem>>
    %141 = vector.broadcast %140 : i32 to vector<1x16xi32>
    %142 = arith.cmpi eq, %1, %141 : vector<1x16xi32>
    %143 = arith.extui %142 : vector<1x16xi1> to vector<1x16xi32>
    %144 = arith.sitofp %143 : vector<1x16xi32> to vector<1x16xf32>
    %c1_55 = arith.constant 1 : index
    %145 = memref.load %arg2[%c1_55] : memref<5xi32, #tpu.memory_space<smem>>
    %c0_i32_56 = arith.constant 0 : i32
    %146 = arith.cmpi ne, %145, %c0_i32_56 : i32
    %147 = arith.select %146, %144, %139 : vector<1x16xf32>
    %cst_57 = arith.constant dense<0.000000e+00> : vector<1x32xf32>
    %148 = tpu.matmul %122, %17, %cst_57 {dimension_numbers = #tpu.dot_dimension_numbers<[1], [0], [0], [1], [0, 0, 1, 1], [], []>} : vector<1x32xf32>, vector<32x32xf32>, vector<1x32xf32> -> vector<1x32xf32>
    %149 = vector.broadcast %148 : vector<1x32xf32> to vector<16x32xf32>
    %150 = arith.addf %16, %149 : vector<16x32xf32>
    %151 = math.tanh %150 : vector<16x32xf32>
    %cst_58 = arith.constant dense<0.000000e+00> : vector<1x16xf32>
    %152 = tpu.matmul %18, %151, %cst_58 {dimension_numbers = #tpu.dot_dimension_numbers<[1], [1], [0], [0], [0, 0, 1, 0], [], []>} : vector<1x32xf32>, vector<16x32xf32>, vector<1x16xf32> -> vector<1x16xf32>
    %cst_59 = arith.constant dense<0xFF800000> : vector<1xf32>
    %153 = vector.multi_reduction <maximumf>, %152, %cst_59 [1] : vector<1x16xf32> to vector<1xf32>
    %154 = vector.shape_cast %153 : vector<1xf32> to vector<1x1xf32>
    %155 = vector.broadcast %154 : vector<1x1xf32> to vector<1x16xf32>
    %156 = arith.subf %152, %155 : vector<1x16xf32>
    %157 = math.exp %156 : vector<1x16xf32>
    %cst_60 = arith.constant dense<0.000000e+00> : vector<1xf32>
    %158 = vector.multi_reduction <add>, %157, %cst_60 [1] : vector<1x16xf32> to vector<1xf32>
    %159 = vector.shape_cast %158 : vector<1xf32> to vector<1x1xf32>
    %160 = vector.broadcast %159 : vector<1x1xf32> to vector<1x16xf32>
    %161 = arith.divf %157, %160 : vector<1x16xf32>
    %cst_61 = arith.constant dense<0.000000e+00> : vector<1x64xf32>
    %162 = tpu.matmul %161, %11, %cst_61 {dimension_numbers = #tpu.dot_dimension_numbers<[1], [0], [0], [1], [0, 0, 1, 1], [], []>} : vector<1x16xf32>, vector<16x64xf32>, vector<1x64xf32> -> vector<1x64xf32>
    %163 = tpu.concatenate %147, %162, %122 in 1 : vector<1x16xf32>, vector<1x64xf32>, vector<1x32xf32> -> vector<1x112xf32>
    %164 = arith.truncf %163 : vector<1x112xf32> to vector<1x112xbf16>
    %cst_62 = arith.constant dense<0.000000e+00> : vector<1x128xf32>
    %165 = tpu.matmul %164, %19, %cst_62 {dimension_numbers = #tpu.dot_dimension_numbers<[1], [0], [0], [1], [0, 0, 1, 1], [], []>} : vector<1x112xbf16>, vector<112x128xbf16>, vector<1x128xf32> -> vector<1x128xf32>
    %166 = arith.addf %165, %20 : vector<1x128xf32>
    %167 = arith.negf %166 : vector<1x128xf32>
    %168 = math.exp %167 : vector<1x128xf32>
    %cst_63 = arith.constant 1.000000e+00 : f32
    %169 = vector.broadcast %cst_63 : f32 to vector<1x128xf32>
    %170 = arith.addf %169, %168 : vector<1x128xf32>
    %171 = arith.divf %169, %170 : vector<1x128xf32>
    %172 = math.tanh %166 : vector<1x128xf32>
    %173 = vector.extract_strided_slice %171 {offsets = [0, 0], sizes = [1, 32], strides = [1, 1]} : vector<1x128xf32> to vector<1x32xf32>
    %174 = vector.extract_strided_slice %171 {offsets = [0, 32], sizes = [1, 32], strides = [1, 1]} : vector<1x128xf32> to vector<1x32xf32>
    %175 = vector.extract_strided_slice %172 {offsets = [0, 64], sizes = [1, 32], strides = [1, 1]} : vector<1x128xf32> to vector<1x32xf32>
    %176 = vector.extract_strided_slice %171 {offsets = [0, 96], sizes = [1, 32], strides = [1, 1]} : vector<1x128xf32> to vector<1x32xf32>
    %177 = arith.mulf %174, %120 : vector<1x32xf32>
    %178 = arith.mulf %173, %175 : vector<1x32xf32>
    %179 = arith.addf %177, %178 : vector<1x32xf32>
    %180 = math.tanh %179 : vector<1x32xf32>
    %181 = arith.mulf %176, %180 : vector<1x32xf32>
    %182 = tpu.concatenate %147, %162, %181 in 1 : vector<1x16xf32>, vector<1x64xf32>, vector<1x32xf32> -> vector<1x112xf32>
    %183 = arith.truncf %182 : vector<1x112xf32> to vector<1x112xbf16>
    %cst_64 = arith.constant dense<0.000000e+00> : vector<1x128xf32>
    %184 = tpu.matmul %183, %21, %cst_64 {dimension_numbers = #tpu.dot_dimension_numbers<[1], [0], [0], [1], [0, 0, 1, 1], [], []>} : vector<1x112xbf16>, vector<112x128xbf16>, vector<1x128xf32> -> vector<1x128xf32>
    %185 = arith.addf %184, %22 : vector<1x128xf32>
    %c2_65 = arith.constant 2 : index
    %c0_66 = arith.constant 0 : index
    %186 = vector.load %arg15[%c2_65, %c0_66] : memref<5x128xf32, #tpu.memory_space<vmem>>, vector<1x128xf32>
    tpu.vector_store %arg15[%c2_65, %c0_66], %185 {strides = array<i32>} : memref<5x128xf32, #tpu.memory_space<vmem>>, vector<1x128xf32>,
    %cst_67 = arith.constant dense<0xFF800000> : vector<1xf32>
    %187 = vector.multi_reduction <maximumf>, %185, %cst_67 [1] : vector<1x128xf32> to vector<1xf32>
    %188 = vector.shape_cast %187 : vector<1xf32> to vector<1x1xf32>
    %189 = vector.broadcast %188 : vector<1x1xf32> to vector<1x128xf32>
    %190 = arith.cmpf oge, %185, %189 : vector<1x128xf32>
    %c128_i32_68 = arith.constant 128 : i32
    %191 = vector.broadcast %c128_i32_68 : i32 to vector<1x128xi32>
    %192 = arith.select %190, %0, %191 : vector<1x128xi1>, vector<1x128xi32>
    %cst_69 = arith.constant dense<2147483647> : vector<1xi32>
    %193 = vector.multi_reduction <minsi>, %192, %cst_69 [1] : vector<1x128xi32> to vector<1xi32>
    %194 = vector.shape_cast %193 : vector<1xi32> to vector<1x1xi32>
    %195 = vector.broadcast %194 : vector<1x1xi32> to vector<1x16xi32>
    %196 = arith.cmpi eq, %1, %195 : vector<1x16xi32>
    %197 = arith.extui %196 : vector<1x16xi1> to vector<1x16xi32>
    %198 = arith.sitofp %197 : vector<1x16xi32> to vector<1x16xf32>
    %c3 = arith.constant 3 : index
    %199 = memref.load %arg1[%c3] : memref<6xi32, #tpu.memory_space<smem>>
    %200 = vector.broadcast %199 : i32 to vector<1x16xi32>
    %201 = arith.cmpi eq, %1, %200 : vector<1x16xi32>
    %202 = arith.extui %201 : vector<1x16xi1> to vector<1x16xi32>
    %203 = arith.sitofp %202 : vector<1x16xi32> to vector<1x16xf32>
    %c2_70 = arith.constant 2 : index
    %204 = memref.load %arg2[%c2_70] : memref<5xi32, #tpu.memory_space<smem>>
    %c0_i32_71 = arith.constant 0 : i32
    %205 = arith.cmpi ne, %204, %c0_i32_71 : i32
    %206 = arith.select %205, %203, %198 : vector<1x16xf32>
    %cst_72 = arith.constant dense<0.000000e+00> : vector<1x32xf32>
    %207 = tpu.matmul %181, %17, %cst_72 {dimension_numbers = #tpu.dot_dimension_numbers<[1], [0], [0], [1], [0, 0, 1, 1], [], []>} : vector<1x32xf32>, vector<32x32xf32>, vector<1x32xf32> -> vector<1x32xf32>
    %208 = vector.broadcast %207 : vector<1x32xf32> to vector<16x32xf32>
    %209 = arith.addf %16, %208 : vector<16x32xf32>
    %210 = math.tanh %209 : vector<16x32xf32>
    %cst_73 = arith.constant dense<0.000000e+00> : vector<1x16xf32>
    %211 = tpu.matmul %18, %210, %cst_73 {dimension_numbers = #tpu.dot_dimension_numbers<[1], [1], [0], [0], [0, 0, 1, 0], [], []>} : vector<1x32xf32>, vector<16x32xf32>, vector<1x16xf32> -> vector<1x16xf32>
    %cst_74 = arith.constant dense<0xFF800000> : vector<1xf32>
    %212 = vector.multi_reduction <maximumf>, %211, %cst_74 [1] : vector<1x16xf32> to vector<1xf32>
    %213 = vector.shape_cast %212 : vector<1xf32> to vector<1x1xf32>
    %214 = vector.broadcast %213 : vector<1x1xf32> to vector<1x16xf32>
    %215 = arith.subf %211, %214 : vector<1x16xf32>
    %216 = math.exp %215 : vector<1x16xf32>
    %cst_75 = arith.constant dense<0.000000e+00> : vector<1xf32>
    %217 = vector.multi_reduction <add>, %216, %cst_75 [1] : vector<1x16xf32> to vector<1xf32>
    %218 = vector.shape_cast %217 : vector<1xf32> to vector<1x1xf32>
    %219 = vector.broadcast %218 : vector<1x1xf32> to vector<1x16xf32>
    %220 = arith.divf %216, %219 : vector<1x16xf32>
    %cst_76 = arith.constant dense<0.000000e+00> : vector<1x64xf32>
    %221 = tpu.matmul %220, %11, %cst_76 {dimension_numbers = #tpu.dot_dimension_numbers<[1], [0], [0], [1], [0, 0, 1, 1], [], []>} : vector<1x16xf32>, vector<16x64xf32>, vector<1x64xf32> -> vector<1x64xf32>
    %222 = tpu.concatenate %206, %221, %181 in 1 : vector<1x16xf32>, vector<1x64xf32>, vector<1x32xf32> -> vector<1x112xf32>
    %223 = arith.truncf %222 : vector<1x112xf32> to vector<1x112xbf16>
    %cst_77 = arith.constant dense<0.000000e+00> : vector<1x128xf32>
    %224 = tpu.matmul %223, %19, %cst_77 {dimension_numbers = #tpu.dot_dimension_numbers<[1], [0], [0], [1], [0, 0, 1, 1], [], []>} : vector<1x112xbf16>, vector<112x128xbf16>, vector<1x128xf32> -> vector<1x128xf32>
    %225 = arith.addf %224, %20 : vector<1x128xf32>
    %226 = arith.negf %225 : vector<1x128xf32>
    %227 = math.exp %226 : vector<1x128xf32>
    %cst_78 = arith.constant 1.000000e+00 : f32
    %228 = vector.broadcast %cst_78 : f32 to vector<1x128xf32>
    %229 = arith.addf %228, %227 : vector<1x128xf32>
    %230 = arith.divf %228, %229 : vector<1x128xf32>
    %231 = math.tanh %225 : vector<1x128xf32>
    %232 = vector.extract_strided_slice %230 {offsets = [0, 0], sizes = [1, 32], strides = [1, 1]} : vector<1x128xf32> to vector<1x32xf32>
    %233 = vector.extract_strided_slice %230 {offsets = [0, 32], sizes = [1, 32], strides = [1, 1]} : vector<1x128xf32> to vector<1x32xf32>
    %234 = vector.extract_strided_slice %231 {offsets = [0, 64], sizes = [1, 32], strides = [1, 1]} : vector<1x128xf32> to vector<1x32xf32>
    %235 = vector.extract_strided_slice %230 {offsets = [0, 96], sizes = [1, 32], strides = [1, 1]} : vector<1x128xf32> to vector<1x32xf32>
    %236 = arith.mulf %233, %179 : vector<1x32xf32>
    %237 = arith.mulf %232, %234 : vector<1x32xf32>
    %238 = arith.addf %236, %237 : vector<1x32xf32>
    %239 = math.tanh %238 : vector<1x32xf32>
    %240 = arith.mulf %235, %239 : vector<1x32xf32>
    %241 = tpu.concatenate %206, %221, %240 in 1 : vector<1x16xf32>, vector<1x64xf32>, vector<1x32xf32> -> vector<1x112xf32>
    %242 = arith.truncf %241 : vector<1x112xf32> to vector<1x112xbf16>
    %cst_79 = arith.constant dense<0.000000e+00> : vector<1x128xf32>
    %243 = tpu.matmul %242, %21, %cst_79 {dimension_numbers = #tpu.dot_dimension_numbers<[1], [0], [0], [1], [0, 0, 1, 1], [], []>} : vector<1x112xbf16>, vector<112x128xbf16>, vector<1x128xf32> -> vector<1x128xf32>
    %244 = arith.addf %243, %22 : vector<1x128xf32>
    %c3_80 = arith.constant 3 : index
    %c0_81 = arith.constant 0 : index
    %245 = vector.load %arg15[%c3_80, %c0_81] : memref<5x128xf32, #tpu.memory_space<vmem>>, vector<1x128xf32>
    tpu.vector_store %arg15[%c3_80, %c0_81], %244 {strides = array<i32>} : memref<5x128xf32, #tpu.memory_space<vmem>>, vector<1x128xf32>,
    %cst_82 = arith.constant dense<0xFF800000> : vector<1xf32>
    %246 = vector.multi_reduction <maximumf>, %244, %cst_82 [1] : vector<1x128xf32> to vector<1xf32>
    %247 = vector.shape_cast %246 : vector<1xf32> to vector<1x1xf32>
    %248 = vector.broadcast %247 : vector<1x1xf32> to vector<1x128xf32>
    %249 = arith.cmpf oge, %244, %248 : vector<1x128xf32>
    %c128_i32_83 = arith.constant 128 : i32
    %250 = vector.broadcast %c128_i32_83 : i32 to vector<1x128xi32>
    %251 = arith.select %249, %0, %250 : vector<1x128xi1>, vector<1x128xi32>
    %cst_84 = arith.constant dense<2147483647> : vector<1xi32>
    %252 = vector.multi_reduction <minsi>, %251, %cst_84 [1] : vector<1x128xi32> to vector<1xi32>
    %253 = vector.shape_cast %252 : vector<1xi32> to vector<1x1xi32>
    %254 = vector.broadcast %253 : vector<1x1xi32> to vector<1x16xi32>
    %255 = arith.cmpi eq, %1, %254 : vector<1x16xi32>
    %256 = arith.extui %255 : vector<1x16xi1> to vector<1x16xi32>
    %257 = arith.sitofp %256 : vector<1x16xi32> to vector<1x16xf32>
    %c4 = arith.constant 4 : index
    %258 = memref.load %arg1[%c4] : memref<6xi32, #tpu.memory_space<smem>>
    %259 = vector.broadcast %258 : i32 to vector<1x16xi32>
    %260 = arith.cmpi eq, %1, %259 : vector<1x16xi32>
    %261 = arith.extui %260 : vector<1x16xi1> to vector<1x16xi32>
    %262 = arith.sitofp %261 : vector<1x16xi32> to vector<1x16xf32>
    %c3_85 = arith.constant 3 : index
    %263 = memref.load %arg2[%c3_85] : memref<5xi32, #tpu.memory_space<smem>>
    %c0_i32_86 = arith.constant 0 : i32
    %264 = arith.cmpi ne, %263, %c0_i32_86 : i32
    %265 = arith.select %264, %262, %257 : vector<1x16xf32>
    %cst_87 = arith.constant dense<0.000000e+00> : vector<1x32xf32>
    %266 = tpu.matmul %240, %17, %cst_87 {dimension_numbers = #tpu.dot_dimension_numbers<[1], [0], [0], [1], [0, 0, 1, 1], [], []>} : vector<1x32xf32>, vector<32x32xf32>, vector<1x32xf32> -> vector<1x32xf32>
    %267 = vector.broadcast %266 : vector<1x32xf32> to vector<16x32xf32>
    %268 = arith.addf %16, %267 : vector<16x32xf32>
    %269 = math.tanh %268 : vector<16x32xf32>
    %cst_88 = arith.constant dense<0.000000e+00> : vector<1x16xf32>
    %270 = tpu.matmul %18, %269, %cst_88 {dimension_numbers = #tpu.dot_dimension_numbers<[1], [1], [0], [0], [0, 0, 1, 0], [], []>} : vector<1x32xf32>, vector<16x32xf32>, vector<1x16xf32> -> vector<1x16xf32>
    %cst_89 = arith.constant dense<0xFF800000> : vector<1xf32>
    %271 = vector.multi_reduction <maximumf>, %270, %cst_89 [1] : vector<1x16xf32> to vector<1xf32>
    %272 = vector.shape_cast %271 : vector<1xf32> to vector<1x1xf32>
    %273 = vector.broadcast %272 : vector<1x1xf32> to vector<1x16xf32>
    %274 = arith.subf %270, %273 : vector<1x16xf32>
    %275 = math.exp %274 : vector<1x16xf32>
    %cst_90 = arith.constant dense<0.000000e+00> : vector<1xf32>
    %276 = vector.multi_reduction <add>, %275, %cst_90 [1] : vector<1x16xf32> to vector<1xf32>
    %277 = vector.shape_cast %276 : vector<1xf32> to vector<1x1xf32>
    %278 = vector.broadcast %277 : vector<1x1xf32> to vector<1x16xf32>
    %279 = arith.divf %275, %278 : vector<1x16xf32>
    %cst_91 = arith.constant dense<0.000000e+00> : vector<1x64xf32>
    %280 = tpu.matmul %279, %11, %cst_91 {dimension_numbers = #tpu.dot_dimension_numbers<[1], [0], [0], [1], [0, 0, 1, 1], [], []>} : vector<1x16xf32>, vector<16x64xf32>, vector<1x64xf32> -> vector<1x64xf32>
    %281 = tpu.concatenate %265, %280, %240 in 1 : vector<1x16xf32>, vector<1x64xf32>, vector<1x32xf32> -> vector<1x112xf32>
    %282 = arith.truncf %281 : vector<1x112xf32> to vector<1x112xbf16>
    %cst_92 = arith.constant dense<0.000000e+00> : vector<1x128xf32>
    %283 = tpu.matmul %282, %19, %cst_92 {dimension_numbers = #tpu.dot_dimension_numbers<[1], [0], [0], [1], [0, 0, 1, 1], [], []>} : vector<1x112xbf16>, vector<112x128xbf16>, vector<1x128xf32> -> vector<1x128xf32>
    %284 = arith.addf %283, %20 : vector<1x128xf32>
    %285 = arith.negf %284 : vector<1x128xf32>
    %286 = math.exp %285 : vector<1x128xf32>
    %cst_93 = arith.constant 1.000000e+00 : f32
    %287 = vector.broadcast %cst_93 : f32 to vector<1x128xf32>
    %288 = arith.addf %287, %286 : vector<1x128xf32>
    %289 = arith.divf %287, %288 : vector<1x128xf32>
    %290 = math.tanh %284 : vector<1x128xf32>
    %291 = vector.extract_strided_slice %289 {offsets = [0, 0], sizes = [1, 32], strides = [1, 1]} : vector<1x128xf32> to vector<1x32xf32>
    %292 = vector.extract_strided_slice %289 {offsets = [0, 32], sizes = [1, 32], strides = [1, 1]} : vector<1x128xf32> to vector<1x32xf32>
    %293 = vector.extract_strided_slice %290 {offsets = [0, 64], sizes = [1, 32], strides = [1, 1]} : vector<1x128xf32> to vector<1x32xf32>
    %294 = vector.extract_strided_slice %289 {offsets = [0, 96], sizes = [1, 32], strides = [1, 1]} : vector<1x128xf32> to vector<1x32xf32>
    %295 = arith.mulf %292, %238 : vector<1x32xf32>
    %296 = arith.mulf %291, %293 : vector<1x32xf32>
    %297 = arith.addf %295, %296 : vector<1x32xf32>
    %298 = math.tanh %297 : vector<1x32xf32>
    %299 = arith.mulf %294, %298 : vector<1x32xf32>
    %300 = tpu.concatenate %265, %280, %299 in 1 : vector<1x16xf32>, vector<1x64xf32>, vector<1x32xf32> -> vector<1x112xf32>
    %301 = arith.truncf %300 : vector<1x112xf32> to vector<1x112xbf16>
    %cst_94 = arith.constant dense<0.000000e+00> : vector<1x128xf32>
    %302 = tpu.matmul %301, %21, %cst_94 {dimension_numbers = #tpu.dot_dimension_numbers<[1], [0], [0], [1], [0, 0, 1, 1], [], []>} : vector<1x112xbf16>, vector<112x128xbf16>, vector<1x128xf32> -> vector<1x128xf32>
    %303 = arith.addf %302, %22 : vector<1x128xf32>
    %c4_95 = arith.constant 4 : index
    %c0_96 = arith.constant 0 : index
    %304 = vector.load %arg15[%c4_95, %c0_96] : memref<5x128xf32, #tpu.memory_space<vmem>>, vector<1x128xf32>
    tpu.vector_store %arg15[%c4_95, %c0_96], %303 {strides = array<i32>} : memref<5x128xf32, #tpu.memory_space<vmem>>, vector<1x128xf32>,
    return
  }
  func.func @transform_0(%arg0: i32, %arg1: memref<6xi32, #tpu.memory_space<smem>>, %arg2: memref<5xi32, #tpu.memory_space<smem>>) -> (i32, i32) {
    %c0_i32 = arith.constant 0 : i32
    %c0_i32_0 = arith.constant 0 : i32
    %c0_i32_1 = arith.constant 0 : i32
    return %c0_i32, %c0_i32_0 : i32, i32
  }
  func.func @transform_1(%arg0: i32, %arg1: memref<6xi32, #tpu.memory_space<smem>>, %arg2: memref<5xi32, #tpu.memory_space<smem>>) -> (i32, i32) {
    %c0_i32 = arith.constant 0 : i32
    %c0_i32_0 = arith.constant 0 : i32
    %c0_i32_1 = arith.constant 0 : i32
    return %c0_i32, %c0_i32_0 : i32, i32
  }
  func.func @transform_2(%arg0: i32, %arg1: memref<6xi32, #tpu.memory_space<smem>>, %arg2: memref<5xi32, #tpu.memory_space<smem>>) -> (i32, i32) {
    %c0_i32 = arith.constant 0 : i32
    %c0_i32_0 = arith.constant 0 : i32
    %c0_i32_1 = arith.constant 0 : i32
    return %c0_i32, %c0_i32_0 : i32, i32
  }
  func.func @transform_3(%arg0: i32, %arg1: memref<6xi32, #tpu.memory_space<smem>>, %arg2: memref<5xi32, #tpu.memory_space<smem>>) -> (i32, i32) {
    %c0_i32 = arith.constant 0 : i32
    %c0_i32_0 = arith.constant 0 : i32
    %c0_i32_1 = arith.constant 0 : i32
    return %c0_i32, %c0_i32_0 : i32, i32
  }
  func.func @transform_4(%arg0: i32, %arg1: memref<6xi32, #tpu.memory_space<smem>>, %arg2: memref<5xi32, #tpu.memory_space<smem>>) -> (i32, i32) {
    %c0_i32 = arith.constant 0 : i32
    %c0_i32_0 = arith.constant 0 : i32
    %c0_i32_1 = arith.constant 0 : i32
    return %c0_i32, %c0_i32_0 : i32, i32
  }
  func.func @transform_5(%arg0: i32, %arg1: memref<6xi32, #tpu.memory_space<smem>>, %arg2: memref<5xi32, #tpu.memory_space<smem>>) -> (i32, i32) {
    %c0_i32 = arith.constant 0 : i32
    %c0_i32_0 = arith.constant 0 : i32
    %c0_i32_1 = arith.constant 0 : i32
    return %c0_i32, %c0_i32_0 : i32, i32
  }
  func.func @transform_6(%arg0: i32, %arg1: memref<6xi32, #tpu.memory_space<smem>>, %arg2: memref<5xi32, #tpu.memory_space<smem>>) -> (i32, i32) {
    %c0_i32 = arith.constant 0 : i32
    %c0_i32_0 = arith.constant 0 : i32
    %c0_i32_1 = arith.constant 0 : i32
    return %c0_i32, %c0_i32_0 : i32, i32
  }
  func.func @transform_7(%arg0: i32, %arg1: memref<6xi32, #tpu.memory_space<smem>>, %arg2: memref<5xi32, #tpu.memory_space<smem>>) -> (i32, i32) {
    %c0_i32 = arith.constant 0 : i32
    %c0_i32_0 = arith.constant 0 : i32
    %c0_i32_1 = arith.constant 0 : i32
    return %c0_i32, %c0_i32_0 : i32, i32
  }
  func.func @transform_8(%arg0: i32, %arg1: memref<6xi32, #tpu.memory_space<smem>>, %arg2: memref<5xi32, #tpu.memory_space<smem>>) -> (i32, i32) {
    %c0_i32 = arith.constant 0 : i32
    %c0_i32_0 = arith.constant 0 : i32
    %c0_i32_1 = arith.constant 0 : i32
    return %c0_i32, %c0_i32_0 : i32, i32
  }
  func.func @transform_9(%arg0: i32, %arg1: memref<6xi32, #tpu.memory_space<smem>>, %arg2: memref<5xi32, #tpu.memory_space<smem>>) -> (i32, i32) {
    %c0_i32 = arith.constant 0 : i32
    %c0_i32_0 = arith.constant 0 : i32
    %c0_i32_1 = arith.constant 0 : i32
    return %c0_i32, %c0_i32_0 : i32, i32
  }
  func.func @transform_10(%arg0: i32, %arg1: memref<6xi32, #tpu.memory_space<smem>>, %arg2: memref<5xi32, #tpu.memory_space<smem>>) -> (i32, i32) {
    %c0_i32 = arith.constant 0 : i32
    %c0_i32_0 = arith.constant 0 : i32
    %c0_i32_1 = arith.constant 0 : i32
    return %c0_i32, %c0_i32_0 : i32, i32
  }
  func.func @transform_11(%arg0: i32, %arg1: memref<6xi32, #tpu.memory_space<smem>>, %arg2: memref<5xi32, #tpu.memory_space<smem>>) -> (i32, i32) {
    %c0_i32 = arith.constant 0 : i32
    %c0_i32_0 = arith.constant 0 : i32
    %c0_i32_1 = arith.constant 0 : i32
    return %c0_i32, %c0_i32_0 : i32, i32
  }
  func.func @transform_12(%arg0: i32, %arg1: memref<6xi32, #tpu.memory_space<smem>>, %arg2: memref<5xi32, #tpu.memory_space<smem>>) -> (i32, i32) {
    %c0_i32 = arith.constant 0 : i32
    %c0_i32_0 = arith.constant 0 : i32
    %c0_i32_1 = arith.constant 0 : i32
    return %c0_i32, %c0_i32_0 : i32, i32
  }
}

</mosaic_0001>

<bundles_post_ra>
// kernel: seq2seq_forward.1
= control target key start
LH: loop header
LB: loop body
LE: loop exit
PB: predicated region body
PF: predicated region fallthrough
CT: control target
= control target key end

     0   :  { %s1922_s19 = smov [#allocation3]   ;;  %s1923_s20 = smov [#allocation4]   ;;  %s2679_s0 = inlined_call_operand.vmem [shape: s32[6], index: 0, kind: input, shape index: {}]   ;;  %s2680_s2 = inlined_call_operand.vmem [shape: f32[256,36], index: 2, kind: input, shape index: {}]   ;;  %s2681_s3 = inlined_call_operand.vmem [shape: f32[36,64], index: 3, kind: input, shape index: {}]   ;;  %s2682_s4 = inlined_call_operand.vmem [shape: f32[1,64], index: 4, kind: input, shape index: {}]   ;;  %s2683_s5 = inlined_call_operand.vmem [shape: f32[16,256], index: 5, kind: input, shape index: {}]   ;;  %s2684_s6 = inlined_call_operand.vmem [shape: f32[64,32], index: 6, kind: input, shape index: {}]   ;;  %s2685_s7 = inlined_call_operand.vmem [shape: f32[32,32], index: 7, kind: input, shape index: {}]   ;;  %s2686_s8 = inlined_call_operand.vmem [shape: f32[1,32], index: 8, kind: input, shape index: {}]   ;;  %s2687_s9 = inlined_call_operand.vmem [shape: f32[1,32], index: 9, kind: input, shape index: {}]   ;;  %s2688_s10 = inlined_call_operand.vmem [shape: bf16[112,128], index: 10, kind: input, shape index: {}]   ;;  %s2689_s11 = inlined_call_operand.vmem [shape: f32[1,128], index: 11, kind: input, shape index: {}]   ;;  %s2690_s12 = inlined_call_operand.vmem [shape: bf16[112,128], index: 12, kind: input, shape index: {}]   ;;  %s2691_s13 = inlined_call_operand.vmem [shape: f32[1,128], index: 13, kind: input, shape index: {}]   ;;  %s2692_s14 = inlined_call_operand.vmem [shape: f32[5,128], index: 14, kind: output, shape index: {}]   ;;  %s2693_s1 = inlined_call_operand.vmem [shape: s32[5], index: 1, kind: input, shape index: {}]  }
   0x1   :  { %s20_s15 = sshll.u32 %s2679_s0, 4  ;;  %s25_s18 = sshll.u32 %s2693_s1, 4  ;;  %s21_s15 = int_to_ptr.vmem [resolvable:$true] %s20_s15  ;;  %s26_s18 = int_to_ptr.vmem [resolvable:$true] %s25_s18 }
   0x2   :  { %23 = dma.vmem_to_smem %s21_s15, 16, %s1922_s19, [#allocation2] }
   0x3   :  { %28 = dma.vmem_to_smem %s26_s18, 16, %s1923_s20, [#allocation2] }
   0x4   :  { %1920 = dma.done.wait [#allocation2], 32 }
   0x5   :  { %1921 = vsyncadd [#allocation2], 4294967264 }
   0x6   :  { %31 = sfence }
   0x7   :  { %v95_v0 = vld [vmem:[%s2681_s3 + $0x20] sm:$0xf]  ;;  %vm197_vm0 = vcmask 1043456   ;;  %v94_v1 = vld [vmem:[%s2681_s3 + $0x18] sm:$0xff]  ;;  %v93_v2 = vld [vmem:[%s2681_s3 + $0x10] sm:$0xff]  ;;  %vm100_vm1 = vcmask 293888  }
   0x8   :  { %1635 = vmatpush.msk.msra.mxu0 %vm197_vm0, %v95_v0  ;;  %1795 = vmatpush.msk.msra.mxu3 %vm197_vm0, %v95_v0  ;;  %v92_v3 = vld [vmem:[%s2681_s3 + $0x8] sm:$0xff]  ;;  %v91_v4 = vld [vmem:[%s2681_s3] sm:$0xff]  ;;  %v61_v9 = vld [vmem:[%s2680_s2 + $0x10] sm:$0xff]  ;;  %vm408_vm2 = vcmask 523264   ;;  %vm478_vm3 = vcmask 261120   ;;  %vm536_vm4 = vcmask 122880  }
   0x9   :  { %v59_v5 = vld [vmem:[%s2680_s2] sm:$0xff]  ;;  %v60_v7 = vld [vmem:[%s2680_s2 + $0x8] sm:$0xff]  ;;  %v85_v10 = vld [vmem:[%s2680_s2 + $0xd0] sm:$0xff]  ;;  %vm561_vm9 = vcmask 130048   ;;  %s1925_s22 = smov 16   ;;  %s473_s1 = sld [smem:[#allocation3]] }
   0xa   :  { %213 = vmatpush.msra.mxu0 %v94_v1  ;;  %1796 = vmatpush.msra.mxu3 %v94_v1  ;;  %v83_v6 = vld [vmem:[%s2680_s2 + $0xc0] sm:$0xff]  ;;  %v84_v8 = vld [vmem:[%s2680_s2 + $0xc8] sm:$0xff]  ;;  %v62_v11 = vld [vmem:[%s2680_s2 + $0x18] sm:$0xff]  ;;  %vm590_vm11 = vcmask 654336   ;;  %vm635_vm12 = vcmask 916480   ;;  %s1926_s25 = smov 64  }
   0xb   :  { %v86_v12 = vld [vmem:[%s2680_s2 + $0xd8] sm:$0xff]  ;;  %v63_v13 = vld [vmem:[%s2680_s2 + $0x20] sm:$0xff]  ;;  %v64_v15 = vld [vmem:[%s2680_s2 + $0x28] sm:$0xff]  ;;  %s1927_s26 = smov 32   ;;  %s1928_s19 = smov 112  }
   0xc   :  { %214 = vmatpush.msra.mxu0 %v93_v2  ;;  %1797 = vmatpush.msra.mxu3 %v93_v2  ;;  %v87_v14 = vld [vmem:[%s2680_s2 + $0xe0] sm:$0xff]  ;;  %v88_v16 = vld [vmem:[%s2680_s2 + $0xe8] sm:$0xff]  ;;  %v65_v17 = vld [vmem:[%s2680_s2 + $0x30] sm:$0xff]  ;;  %s783_s0 = sld [smem:[#allocation4]] }
   0xd   :  { %v89_v18 = vld [vmem:[%s2680_s2 + $0xf0] sm:$0xff]  ;;  %v66_v19 = vld [vmem:[%s2680_s2 + $0x38] sm:$0xff]  ;;  %v67_v21 = vld [vmem:[%s2680_s2 + $0x40] sm:$0xff]  ;;  %s1746_s27 = sld [smem:[#allocation3 + $0x2]] }
   0xe   :  { %215 = vmatpush.msra.mxu0 %v92_v3  ;;  %1798 = vmatpush.msra.mxu3 %v92_v3  ;;  %v90_v20 = vld [vmem:[%s2680_s2 + $0xf8] sm:$0xff]  ;;  %v68_v22 = vld [vmem:[%s2680_s2 + $0x48] sm:$0xff]  ;;  %v69_v23 = vld [vmem:[%s2680_s2 + $0x50] sm:$0xff] }
   0xf   :  { %v70_v24 = vld [vmem:[%s2680_s2 + $0x58] sm:$0xff]  ;;  %v71_v25 = vld [vmem:[%s2680_s2 + $0x60] sm:$0xff]  ;;  %v72_v26 = vld [vmem:[%s2680_s2 + $0x68] sm:$0xff] }
  0x10   :  { %216 = vmatpush.msra.mxu0 %v91_v4  ;;  %1799 = vmatpush.msra.mxu3 %v91_v4  ;;  %v73_v27 = vld [vmem:[%s2680_s2 + $0x70] sm:$0xff]  ;;  %v74_v28 = vld [vmem:[%s2680_s2 + $0x78] sm:$0xff]  ;;  %v75_v30 = vld [vmem:[%s2680_s2 + $0x80] sm:$0xff] }
  0x11   :  { %1636 = vmatmul.msk.f32.vlgmr.msra.gmra.mxu0 %vm100_vm1, %v59_v5  ;;  %1660 = vmatmul.msk.f32.vlgmr.msra.gmra.mxu3 %vm100_vm1, %v83_v6  ;;  %v76_v32 = vld [vmem:[%s2680_s2 + $0x88] sm:$0xff]  ;;  %v77_v35 = vld [vmem:[%s2680_s2 + $0x90] sm:$0xff]  ;;  %v78_v38 = vld [vmem:[%s2680_s2 + $0x98] sm:$0xff] }
  0x12   :  { %v79_v41 = vld [vmem:[%s2680_s2 + $0xa0] sm:$0xff]  ;;  %v80_v44 = vld [vmem:[%s2680_s2 + $0xa8] sm:$0xff]  ;;  %v81_v47 = vld [vmem:[%s2680_s2 + $0xb0] sm:$0xff]  ;;  %p784_p0 = scmp.ne.s32.totalorder %s783_s0, 0 }
  0x13   :  { %v82_v50 = vld [vmem:[%s2680_s2 + $0xb8] sm:$0xff]  ;;  %v2170_v52 = vld [vmem:[%s2682_s4] ss:$0 sm:$0xff] }
  0x19   :  { %1637 = vmatmul.msk.f32.gmra.mxu0 %vm100_vm1, %v60_v7  ;;  %1661 = vmatmul.msk.f32.gmra.mxu3 %vm100_vm1, %v84_v8 }
  0x21   :  { %1638 = vmatmul.msk.f32.gmra.mxu0 %vm100_vm1, %v61_v9  ;;  %1662 = vmatmul.msk.f32.gmra.mxu3 %vm100_vm1, %v85_v10 }
  0x29   :  { %1639 = vmatmul.msk.f32.gmra.mxu0 %vm100_vm1, %v62_v11  ;;  %1663 = vmatmul.msk.f32.gmra.mxu3 %vm100_vm1, %v86_v12 }
  0x31   :  { %1640 = vmatmul.msk.f32.gmra.mxu0 %vm100_vm1, %v63_v13  ;;  %1664 = vmatmul.msk.f32.gmra.mxu3 %vm100_vm1, %v87_v14 }
  0x39   :  { %1641 = vmatmul.msk.f32.gmra.mxu0 %vm100_vm1, %v64_v15  ;;  %1665 = vmatmul.msk.f32.gmra.mxu3 %vm100_vm1, %v88_v16 }
  0x41   :  { %1642 = vmatmul.msk.f32.gmra.mxu0 %vm100_vm1, %v65_v17  ;;  %1666 = vmatmul.msk.f32.gmra.mxu3 %vm100_vm1, %v89_v18 }
  0x49   :  { %1643 = vmatmul.msk.f32.gmra.mxu0 %vm100_vm1, %v66_v19  ;;  %1667 = vmatmul.msk.f32.gmra.mxu3 %vm100_vm1, %v90_v20 }
  0x51   :  { %1644 = vmatmul.msk.f32.gmra.mxu0 %vm100_vm1, %v67_v21 }
  0x59   :  { %1645 = vmatmul.msk.f32.gmra.mxu0 %vm100_vm1, %v68_v22 }
  0x61   :  { %1646 = vmatmul.msk.f32.gmra.mxu0 %vm100_vm1, %v69_v23 }
  0x69   :  { %1647 = vmatmul.msk.f32.gmra.mxu0 %vm100_vm1, %v70_v24 }
  0x71   :  { %1648 = vmatmul.msk.f32.gmra.mxu0 %vm100_vm1, %v71_v25 }
  0x79   :  { %1649 = vmatmul.msk.f32.gmra.mxu0 %vm100_vm1, %v72_v26 }
  0x81   :  { %1650 = vmatmul.msk.f32.gmra.mxu0 %vm100_vm1, %v73_v27 }
  0x89   :  { %1651 = vmatmul.msk.f32.gmra.mxu0 %vm100_vm1, %v74_v28 }
  0x8e   :  { %v2121_v29 = vpop.f32.mrf.mxu0 }
  0x91   :  { %1652 = vmatmul.msk.f32.gmra.mxu0 %vm100_vm1, %v75_v30 }
  0x94   :  { %v290_v33 = vpop.f32.mrf.mxu3 }
  0x95   :  { %v291_v4 = vadd.f32 %v2170_v52, %v290_v33 }
  0x96   :  { %v2127_v31 = vpop.f32.mrf.mxu0 }
  0x97   :  { %v338_v8 = vmax.f32 %v291_v4, 0.0 }
  0x99   :  { %1653 = vmatmul.msk.f32.gmra.mxu0 %vm100_vm1, %v76_v32 }
  0x9c   :  { %v293_v36 = vpop.f32.mrf.mxu3 }
  0x9d   :  { %v294_v2 = vadd.f32 %v2170_v52, %v293_v36 }
  0x9e   :  { %v2133_v34 = vpop.f32.mrf.mxu0 }
  0x9f   :  { %v339_v6 = vmax.f32 %v294_v2, 0.0 }
  0xa1   :  { %1654 = vmatmul.msk.f32.gmra.mxu0 %vm100_vm1, %v77_v35 }
  0xa4   :  { %v296_v39 = vpop.f32.mrf.mxu3 }
  0xa5   :  { %v297_v0 = vadd.f32 %v2170_v52, %v296_v39 }
  0xa6   :  { %v2139_v37 = vpop.f32.mrf.mxu0 }
  0xa7   :  { %v340_v5 = vmax.f32 %v297_v0, 0.0 }
  0xa9   :  { %1655 = vmatmul.msk.f32.gmra.mxu0 %vm100_vm1, %v78_v38 }
  0xac   :  { %v299_v42 = vpop.f32.mrf.mxu3 }
  0xad   :  { %v300_v61 = vadd.f32 %v2170_v52, %v299_v42 }
  0xae   :  { %v2145_v40 = vpop.f32.mrf.mxu0 }
  0xaf   :  { %v341_v3 = vmax.f32 %v300_v61, 0.0 }
  0xb1   :  { %1656 = vmatmul.msk.f32.gmra.mxu0 %vm100_vm1, %v79_v41  ;;  %v231_v41 = vadd.f32 %v2170_v52, %v2145_v40  ;;  %v219_v40 = vadd.f32 %v2170_v52, %v2121_v29  ;;  %v348_v29 = vld [vmem:[%s2683_s5 + $0x10] sm:$0xff] }
  0xb4   :  { %v302_v45 = vpop.f32.mrf.mxu3 }
  0xb5   :  { %v303_v58 = vadd.f32 %v2170_v52, %v302_v45 }
  0xb6   :  { %v2151_v43 = vpop.f32.mrf.mxu0 }
  0xb7   :  { %v342_v1 = vmax.f32 %v303_v58, 0.0  ;;  %v234_v38 = vadd.f32 %v2170_v52, %v2151_v43  ;;  %v222_v43 = vadd.f32 %v2170_v52, %v2127_v31  ;;  %v2225_v58 = vld [vmem:[%s2685_s7 + $0x8] sm:$0xff] }
  0xb9   :  { %1657 = vmatmul.msk.f32.gmra.mxu0 %vm100_vm1, %v80_v44  ;;  %v228_v44 = vadd.f32 %v2170_v52, %v2139_v37  ;;  %v319_v45 = vmax.f32 %v234_v38, 0.0 }
  0xbc   :  { %v305_v48 = vpop.f32.mrf.mxu3 }
  0xbd   :  { %v306_v56 = vadd.f32 %v2170_v52, %v305_v48  ;;  %v318_v48 = vmax.f32 %v231_v41, 0.0 }
  0xbe   :  { %v2157_v46 = vpop.f32.mrf.mxu0 }
  0xbf   :  { %v343_v62 = vmax.f32 %v306_v56, 0.0  ;;  %v237_v35 = vadd.f32 %v2170_v52, %v2157_v46  ;;  %v225_v46 = vadd.f32 %v2170_v52, %v2133_v34  ;;  %v2214_v56 = vld [vmem:[%s2685_s7 + $0x18] sm:$0xff] }
  0xc0   :  { %494 = vmatpush.msrb.mxu3 %v2214_v56 }
  0xc1   :  { %1658 = vmatmul.msk.f32.gmra.mxu0 %vm100_vm1, %v81_v47  ;;  %v320_v42 = vmax.f32 %v237_v35, 0.0 }
  0xc4   :  { %v308_v51 = vpop.f32.mrf.mxu3 }
  0xc5   :  { %v309_v54 = vadd.f32 %v2170_v52, %v308_v51  ;;  %v315_v51 = vmax.f32 %v222_v43, 0.0 }
  0xc6   :  { %v239_v49 = vpop.f32.mrf.mxu0 }
  0xc7   :  { %v344_v59 = vmax.f32 %v309_v54, 0.0  ;;  %v240_v30 = vadd.f32 %v2170_v52, %v239_v49  ;;  %v317_v49 = vmax.f32 %v228_v44, 0.0 }
  0xc9   :  { %1659 = vmatmul.msk.f32.gmra.mxu0 %vm100_vm1, %v82_v50  ;;  %v321_v39 = vmax.f32 %v240_v30, 0.0  ;;  %v316_v50 = vmax.f32 %v225_v46, 0.0  ;;  %vm754_vm1 = vcmask 1040384  }
  0xcc   :  { %v311_v55 = vpop.f32.mrf.mxu3 }
  0xcd   :  { %v312_v57 = vadd.f32 %v2170_v52, %v311_v55  ;;  %v346_v55 = vld [vmem:[%s2683_s5] sm:$0xff] }
  0xce   :  { %v242_v53 = vpop.f32.mrf.mxu0 }
  0xcf   :  { %v345_v60 = vmax.f32 %v312_v57, 0.0  ;;  %v243_v27 = vadd.f32 %v2170_v52, %v242_v53  ;;  %v314_v53 = vmax.f32 %v219_v40, 0.0  ;;  %v2219_v57 = vld [vmem:[%s2685_s7 + $0x10] sm:$0xff] }
  0xd0   :  { %495 = vmatpush.msrb.mxu3 %v2219_v57 }
  0xd1   :  { %373 = vmatpush.msra.mxu2 %v345_v60  ;;  %v322_v36 = vmax.f32 %v243_v27, 0.0  ;;  %v2231_v60 = vld [vmem:[%s2685_s7] sm:$0xff] }
  0xd2   :  { %496 = vmatpush.msrb.mxu3 %v2225_v58 }
  0xd3   :  { %374 = vmatpush.msra.mxu2 %v344_v59 }
  0xd4   :  { %497 = vmatpush.msrb.mxu3 %v2231_v60 }
  0xd5   :  { %375 = vmatpush.msra.mxu2 %v343_v62 }
  0xd6   :  { %v245_v63 = vpop.f32.mrf.mxu0 }
  0xd7   :  { %376 = vmatpush.msra.mxu2 %v342_v1  ;;  %v246_v25 = vadd.f32 %v2170_v52, %v245_v63 }
  0xd9   :  { %377 = vmatpush.msra.mxu2 %v341_v3  ;;  %v323_v32 = vmax.f32 %v246_v25, 0.0 }
  0xdb   :  { %378 = vmatpush.msra.mxu2 %v340_v5 }
  0xdd   :  { %379 = vmatpush.msra.mxu2 %v339_v6 }
  0xde   :  { %v248_v7 = vpop.f32.mrf.mxu0 }
  0xdf   :  { %380 = vmatpush.msra.mxu2 %v338_v8  ;;  %v249_v23 = vadd.f32 %v2170_v52, %v248_v7 }
  0xe1   :  { %v324_v28 = vmax.f32 %v249_v23, 0.0 }
  0xe6   :  { %v251_v9 = vpop.f32.mrf.mxu0 }
  0xe7   :  { %v252_v20 = vadd.f32 %v2170_v52, %v251_v9 }
  0xe9   :  { %v325_v26 = vmax.f32 %v252_v20, 0.0  ;;  %v397_v20 = vld [vmem:[%s2684_s6 + $0x8] sm:$0xff] }
  0xee   :  { %v254_v10 = vpop.f32.mrf.mxu0 }
  0xef   :  { %v255_v18 = vadd.f32 %v2170_v52, %v254_v10 }
  0xf1   :  { %v326_v24 = vmax.f32 %v255_v18, 0.0  ;;  %v399_v18 = vld [vmem:[%s2684_s6 + $0x18] sm:$0xff] }
  0xf6   :  { %v257_v11 = vpop.f32.mrf.mxu0 }
  0xf7   :  { %v258_v16 = vadd.f32 %v2170_v52, %v257_v11 }
  0xf9   :  { %v327_v21 = vmax.f32 %v258_v16, 0.0  ;;  %v400_v16 = vld [vmem:[%s2684_s6 + $0x20] sm:$0xff] }
  0xfe   :  { %v260_v12 = vpop.f32.mrf.mxu0 }
  0xff   :  { %v261_v14 = vadd.f32 %v2170_v52, %v260_v12 }
 0x101   :  { %v328_v19 = vmax.f32 %v261_v14, 0.0  ;;  %v403_v14 = vld [vmem:[%s2684_s6 + $0x38] sm:$0xff] }
 0x106   :  { %v263_v13 = vpop.f32.mrf.mxu0 }
 0x107   :  { %v264_v15 = vadd.f32 %v2170_v52, %v263_v13  ;;  %v347_v13 = vld [vmem:[%s2683_s5 + $0x8] sm:$0xff] }
 0x109   :  { %v329_v17 = vmax.f32 %v264_v15, 0.0  ;;  %v401_v15 = vld [vmem:[%s2684_s6 + $0x28] sm:$0xff] }
 0x10b   :  { %350 = vmatpush.msra.mxu1 %v329_v17  ;;  %v349_v17 = vld [vmem:[%s2683_s5 + $0x18] sm:$0xff] }
 0x10d   :  { %351 = vmatpush.msra.mxu1 %v328_v19  ;;  %v398_v19 = vld [vmem:[%s2684_s6 + $0x10] sm:$0xff] }
 0x10e   :  { %v2185_v22 = vpop.f32.mrf.mxu0 }
 0x10f   :  { %352 = vmatpush.msra.mxu1 %v327_v21  ;;  %v267_v9 = vadd.f32 %v2170_v52, %v2185_v22  ;;  %v396_v21 = vld [vmem:[%s2684_s6] sm:$0xff]  ;;  %v1924_v22 = vmov 0.0  }
 0x110   :  { %498 = vmatmul.f32.vlgmr.msrb.gmra.mxu3 %v1924_v22 }
 0x111   :  { %353 = vmatpush.msra.mxu1 %v326_v24  ;;  %v330_v12 = vmax.f32 %v267_v9, 0.0  ;;  %v57_v9 = vlaneseq }
 0x113   :  { %354 = vmatpush.msra.mxu1 %v325_v26 }
 0x115   :  { %355 = vmatpush.msra.mxu1 %v324_v28 }
 0x116   :  { %v269_v33 = vpop.f32.mrf.mxu0 }
 0x117   :  { %356 = vmatpush.msra.mxu1 %v323_v32  ;;  %v270_v7 = vadd.f32 %v2170_v52, %v269_v33  ;;  %v1808_v32 = vld [vmem:[%s2686_s8] ss:$0 sm:$0xff] }
 0x119   :  { %357 = vmatpush.msra.mxu1 %v322_v36  ;;  %v331_v11 = vmax.f32 %v270_v7, 0.0 }
 0x11b   :  { %358 = vmatpush.msra.mxu1 %v321_v39 }
 0x11d   :  { %359 = vmatpush.msra.mxu1 %v320_v42 }
 0x11e   :  { %v272_v47 = vpop.f32.mrf.mxu0 }
 0x11f   :  { %360 = vmatpush.msra.mxu1 %v319_v45  ;;  %v273_v5 = vadd.f32 %v2170_v52, %v272_v47  ;;  %v2301_v47 = vld [vmem:[%s2687_s9] sm:$0x1] }
 0x121   :  { %361 = vmatpush.msra.mxu1 %v318_v48  ;;  %v332_v10 = vmax.f32 %v273_v5, 0.0  ;;  %v2335_v5 = vld [vmem:[%s2688_s10 + $0x10] sm:$0xff] }
 0x123   :  { %362 = vmatpush.msra.mxu1 %v317_v49 }
 0x125   :  { %363 = vmatpush.msra.mxu1 %v316_v50 }
 0x126   :  { %v275_v37 = vpop.f32.mrf.mxu0 }
 0x127   :  { %364 = vmatpush.msra.mxu1 %v315_v51  ;;  %v276_v3 = vadd.f32 %v2170_v52, %v275_v37 }
 0x129   :  { %365 = vmatpush.msra.mxu1 %v314_v53  ;;  %v333_v8 = vmax.f32 %v276_v3, 0.0  ;;  %v2323_v3 = vld [vmem:[%s2688_s10 + $0x20] sm:$0xff] }
 0x12a   :  { %366 = vmatmul.f32.vlgmr.msra.gmra.mxu1 %v346_v55 }
 0x12e   :  { %v278_v54 = vpop.f32.mrf.mxu0 }
 0x12f   :  { %v279_v1 = vadd.f32 %v2170_v52, %v278_v54 }
 0x131   :  { %v334_v6 = vmax.f32 %v279_v1, 0.0  ;;  %v2311_v1 = vld [vmem:[%s2688_s10 + $0x30] sm:$0xff] }
 0x132   :  { %369 = vmatmul.f32.gmra.mxu1 %v348_v29 }
 0x136   :  { %v281_v34 = vpop.f32.mrf.mxu0 }
 0x137   :  { %v282_v63 = vadd.f32 %v2170_v52, %v281_v34 }
 0x139   :  { %v335_v4 = vmax.f32 %v282_v63, 0.0 }
 0x13e   :  { %v284_v31 = vpop.f32.mrf.mxu0 }
 0x13f   :  { %v285_v61 = vadd.f32 %v2170_v52, %v284_v31 }
 0x141   :  { %v336_v2 = vmax.f32 %v285_v61, 0.0 }
 0x146   :  { %v287_v59 = vpop.f32.mrf.mxu0 }
 0x147   :  { %v288_v62 = vadd.f32 %v2170_v52, %v287_v59  ;;  %v402_v52 = vld [vmem:[%s2684_s6 + $0x30] sm:$0xff]  ;;  %s1748_s6 = sld [smem:[#allocation4 + $0x1]] }
 0x149   :  { %v337_v0 = vmax.f32 %v288_v62, 0.0 }
 0x14b   :  { %381 = vmatpush.msra.mxu2 %v337_v0 }
 0x14d   :  { %382 = vmatpush.msra.mxu2 %v336_v2  ;;  %v2317_v2 = vld [vmem:[%s2688_s10 + $0x28] sm:$0xff]  ;;  %p1003_p1 = scmp.ne.s32.totalorder %s1748_s6, 0 }
 0x14f   :  { %383 = vmatpush.msra.mxu2 %v335_v4  ;;  %v2329_v4 = vld [vmem:[%s2688_s10 + $0x18] sm:$0xff]  ;;  %s1004_s8 = scalar_select %p1003_p1, 1, 0 }
 0x151   :  { %384 = vmatpush.msra.mxu2 %v334_v6  ;;  %v2341_v6 = vld [vmem:[%s2688_s10 + $0x8] sm:$0xff] }
 0x153   :  { %385 = vmatpush.msra.mxu2 %v333_v8  ;;  %v2348_v8 = vld [vmem:[%s2688_s10] sm:$0xff]  ;;  %s785_s10 = scalar_select %p784_p0, 1, 0 }
 0x155   :  { %386 = vmatpush.msra.mxu2 %v332_v10  ;;  %v2356_v10 = vand.u32 127, %v57_v9 }
 0x157   :  { %387 = vmatpush.msra.mxu2 %v331_v11  ;;  %v474_v11 = vstv %s473_s1  ;;  %s1735_s1 = sld [smem:[#allocation3 + $0x1]] }
 0x158   :  { %vm475_vm10 = vcmp.eq.s32.totalorder %v2356_v10, %v474_v11 }
 0x159   :  { %388 = vmatpush.msra.mxu2 %v330_v12  ;;  %v1670_v12 = vsel %vm475_vm10, 1.0, %v1924_v22 }
 0x15a   :  { %389 = vmatmul.f32.vlgmr.msra.gmra.mxu2 %v347_v13 }
 0x15b   :  { %423 = vmatpush.msrb.mxu2 %v403_v14 }
 0x15d   :  { %424 = vmatpush.msrb.mxu2 %v402_v52 }
 0x15f   :  { %425 = vmatpush.msrb.mxu2 %v401_v15 }
 0x161   :  { %426 = vmatpush.msrb.mxu2 %v400_v16  ;;  %v2378_v16 = vld [vmem:[%s2689_s11] sm:$0x1] }
 0x162   :  { %392 = vmatmul.f32.gmra.mxu2 %v349_v17 }
 0x163   :  { %427 = vmatpush.msrb.mxu2 %v399_v18 }
 0x165   :  { %428 = vmatpush.msrb.mxu2 %v398_v19 }
 0x167   :  { %429 = vmatpush.msrb.mxu2 %v397_v20 }
 0x169   :  { %430 = vmatpush.msrb.mxu2 %v396_v21 }
 0x16b   :  { %640 = vmatpush.bf16.msra.mxu2 %v2311_v1 }
 0x16f   :  { %641 = vmatpush.bf16.msra.mxu2 %v2317_v2 }
 0x173   :  { %642 = vmatpush.bf16.msra.mxu2 %v2323_v3 }
 0x177   :  { %643 = vmatpush.bf16.msra.mxu2 %v2329_v4 }
 0x17b   :  { %644 = vmatpush.bf16.msra.mxu2 %v2335_v5 }
 0x17f   :  { %645 = vmatpush.bf16.msra.mxu2 %v2341_v6 }
 0x183   :  { %646 = vmatpush.bf16.msra.mxu2 %v2348_v8 }
 0x193   :  { %v499_v33 = vpop.f32.mrf.mxu3 }
 0x194   :  { %v502_v38 = vperm.slane %v499_v33, 0 }
 0x1a7   :  { %v367_v23 = vpop.f32.mrf.mxu1 }
 0x1af   :  { %v370_v26 = vpop.f32.mrf.mxu1 }
 0x1dd   :  { %v390_v24 = vpop.f32.mrf.mxu2 }
 0x1de   :  { %v2275_v25 = vadd.f32 %v390_v24, %v367_v23 }
 0x1e0   :  { %1668 = vmatmul.msk.f32.vlgmr.msrb.gmra.mxu2 %vm408_vm2, %v2275_v25 }
 0x1e1   :  { %902 = vmatpush.bf16.msrb.mxu2 %v2311_v1 }
 0x1e5   :  { %v393_v27 = vpop.f32.mrf.mxu2  ;;  %903 = vmatpush.bf16.msrb.mxu2 %v2317_v2 }
 0x1e6   :  { %v2278_v28 = vadd.f32 %v393_v27, %v370_v26 }
 0x1e8   :  { %1669 = vmatmul.msk.f32.gmra.mxu2 %vm408_vm2, %v2278_v28  ;;  %579 = vmatpush.msrb.mxu1 %v2278_v28 }
 0x1e9   :  { %904 = vmatpush.bf16.msrb.mxu2 %v2323_v3 }
 0x1ea   :  { %580 = vmatpush.msrb.mxu1 %v2275_v25 }
 0x1ec   :  { %805 = vmatpush.msra.mxu1 %v2214_v56 }
 0x1ed   :  { %905 = vmatpush.bf16.msrb.mxu2 %v2329_v4 }
 0x1ee   :  { %806 = vmatpush.msra.mxu1 %v2219_v57 }
 0x1f0   :  { %807 = vmatpush.msra.mxu1 %v2225_v58 }
 0x1f1   :  { %906 = vmatpush.bf16.msrb.mxu2 %v2335_v5 }
 0x1f2   :  { %808 = vmatpush.msra.mxu1 %v2231_v60 }
 0x1f5   :  { %907 = vmatpush.bf16.msrb.mxu2 %v2341_v6 }
 0x1f9   :  { %908 = vmatpush.bf16.msrb.mxu2 %v2348_v8 }
 0x263   :  { %v432_v30 = vpop.f32.mrf.mxu2 }
 0x264   :  { %v2290_v36 = vadd.f32 %v1808_v32, %v432_v30 }
 0x266   :  { %v503_v42 = vadd.f32 %v502_v38, %v2290_v36 }
 0x26b   :  { %v435_v35 = vpop.f32.mrf.mxu2 }
 0x26c   :  { %v2292_v39 = vadd.f32 %v1808_v32, %v435_v35 }
 0x26e   :  { %v504_v41 = vadd.f32 %v502_v38, %v2292_v39 }
 0x270   :  { %1809 = vtanh.f32 %v504_v41 }
 0x271   :  { %1811 = vtanh.f32 %v503_v42 }
 0x276   :  { %v1810_v44 = vpop.eup %1809 }
 0x277   :  { %1671 = vmatpush.xpose.msk.msra.mxu3 %vm478_vm3, %v1810_v44  ;;  %v1812_v45 = vpop.eup %1811 }
 0x27b   :  { %1672 = vmatpush.xpose.msk.msra.mxu3 %vm478_vm3, %v1812_v45 }
 0x27e   :  { %1673 = vmatmul.msk.f32.vlgmr.msra.gmra.mxu3 %vm478_vm3, %v2301_v47 }
 0x301   :  { %v533_v46 = vpop.f32.mrf.mxu3 }
 0x302   :  { %v537_v48 = vsel %vm536_vm4, %v533_v46, -inf }
 0x303   :  { %538 = vmax.xlane.f32.xlu0 %v537_v48 }
 0x376   :  { %v539_v43 = vpop.xlane.xlu0 %538 }
 0x377   :  { %v540_v49 = vsub.f32 %v533_v46, %v539_v43 }
 0x379   :  { %v541_v40 = vmul.f32 1.442695, %v540_v49 }
 0x37b   :  { %1813 = vpow2.f32 %v541_v40 }
 0x381   :  { %v1814_v50 = vpop.eup %1813 }
 0x382   :  { %v543_v51 = vsel %vm536_vm4, %v1814_v50, 0.0 }
 0x383   :  { %544 = vadd.xlane.f32.xlu0 %v543_v51  ;;  %v2396_v51 = vld [vmem:[%s2690_s12 + $0x28] sm:$0xff] }
 0x3f6   :  { %v545_v37 = vpop.xlane.xlu0 %544 }
 0x3f7   :  { %1815 = vrcp.f32 %v545_v37  ;;  %v557_v55 = vand.u32 2147483648, %v545_v37  ;;  %v555_v29 = vand.u32 2147483647, %v545_v37  ;;  %vm551_vm6 = vweird.f32 %v545_v37 }
 0x3f9   :  { %v558_v61 = vor.u32 1.1754944e-38, %v557_v55  ;;  %vm556_vm8 = vcmp.eq.f32.partialorder %v555_v29, 8.507059e+37  ;;  %v2428_v29 = vld [vmem:[%s2690_s12] sm:$0xff] }
 0x3fd   :  { %v1816_v53 = vpop.eup %1815 }
 0x3fe   :  { %v547_v54 = vmul.f32 %v1816_v53, %v545_v37  ;;  %vm552_vm5 = vweird.f32 %v1816_v53  ;;  %v2402_v37 = vld [vmem:[%s2690_s12 + $0x20] sm:$0xff] }
 0x3ff   :  { %vm553_vm7 = vmor %vm551_vm6, %vm552_vm5 }
 0x400   :  { %v548_v34 = vsub.f32 1.0, %v547_v54  ;;  %v2414_v54 = vld [vmem:[%s2690_s12 + $0x10] sm:$0xff] }
 0x402   :  { %v549_v31 = vmul.f32 %v1816_v53, %v548_v34  ;;  %v2420_v34 = vld [vmem:[%s2690_s12 + $0x8] sm:$0xff] }
 0x404   :  { %v550_v59 = vadd.f32 %v1816_v53, %v549_v31 }
 0x406   :  { %v554_v62 = vsel %vm553_vm7, %v1816_v53, %v550_v59  ;;  %v2408_v53 = vld [vmem:[%s2690_s12 + $0x18] sm:$0xff] }
 0x407   :  { %v559_v63 = vsel %vm556_vm8, %v558_v61, %v554_v62 }
 0x408   :  { %v560_v0 = vmul.f32 %v1814_v50, %v559_v63  ;;  %v2390_v50 = vld [vmem:[%s2690_s12 + $0x30] sm:$0xff]  ;;  %s1758_s12 = sld [smem:[#allocation3 + $0x3]] }
 0x409   :  { %741 = vmatpush.bf16.msrb.mxu3 %v2390_v50 }
 0x40a   :  { %1674 = vmatmul.msk.f32.vlgmr.msrb.gmra.mxu1 %vm561_vm9, %v560_v0 }
 0x40d   :  { %742 = vmatpush.bf16.msrb.mxu3 %v2396_v51 }
 0x411   :  { %743 = vmatpush.bf16.msrb.mxu3 %v2402_v37 }
 0x415   :  { %744 = vmatpush.bf16.msrb.mxu3 %v2408_v53 }
 0x419   :  { %745 = vmatpush.bf16.msrb.mxu3 %v2414_v54 }
 0x41d   :  { %746 = vmatpush.bf16.msrb.mxu3 %v2420_v34 }
 0x421   :  { %747 = vmatpush.bf16.msrb.mxu3 %v2428_v29 }
 0x425   :  { %961 = vmatpush.bf16.msra.mxu3 %v2390_v50 }
 0x429   :  { %962 = vmatpush.bf16.msra.mxu3 %v2396_v51 }
 0x42d   :  { %963 = vmatpush.bf16.msra.mxu3 %v2402_v37 }
 0x431   :  { %964 = vmatpush.bf16.msra.mxu3 %v2408_v53 }
 0x435   :  { %965 = vmatpush.bf16.msra.mxu3 %v2414_v54 }
 0x439   :  { %966 = vmatpush.bf16.msra.mxu3 %v2420_v34 }
 0x43d   :  { %967 = vmatpush.bf16.msra.mxu3 %v2428_v29 }
 0x487   :  { %v582_v7 = vpop.f32.mrf.mxu1 }
 0x488   :  { %586 = vrot.lane.b32.xlu1 %v582_v7, %s1925_s22 }
 0x4fa   :  { %v587_v13 = vpop.permute.xlu1 %586 }
 0x4fb   :  { %v2363_v14 = vsel %vm561_vm9, %v1670_v12, %v587_v13  ;;  %v2454_v12 = vld [vmem:[%s2691_s13] sm:$0x1] }
 0x4fc   :  { %v591_v52 = vsel %vm590_vm11, %v2363_v14, 0.0 }
 0x4fd   :  { %v592_v15 = vpack.c.bf16 %v591_v52, %v591_v52 }
 0x4ff   :  { %1703 = vmatmul.msk.bf16.vlgmr.msra.gmra.mxu2 %vm635_vm12, %v592_v15 }
 0x500   :  { %1121 = vmatpush.bf16.msra.mxu2 %v2311_v1 }
 0x504   :  { %1122 = vmatpush.bf16.msra.mxu2 %v2317_v2 }
 0x508   :  { %1123 = vmatpush.bf16.msra.mxu2 %v2323_v3 }
 0x50c   :  { %1124 = vmatpush.bf16.msra.mxu2 %v2329_v4 }
 0x510   :  { %1125 = vmatpush.bf16.msra.mxu2 %v2335_v5 }
 0x514   :  { %1126 = vmatpush.bf16.msra.mxu2 %v2341_v6 }
 0x518   :  { %1127 = vmatpush.bf16.msra.mxu2 %v2348_v8 }
 0x582   :  { %v648_v17 = vpop.f32.mrf.mxu2 }
 0x583   :  { %v649_v18 = vadd.f32 %v648_v17, %v2378_v16 }
 0x585   :  { %1817 = vtanh.f32 %v649_v18  ;;  %v1704_v21 = vmul.f32 -1.442695, %v649_v18 }
 0x587   :  { %1819 = vpow2.f32 %v1704_v21 }
 0x58a   :  { %v650_v19 = vpop.f32.mrf.mxu2 }
 0x58b   :  { %v1818_v20 = vpop.eup %1817 }
 0x58c   :  { %674 = vrot.lane.b32.xlu1 %v1818_v20, %s1926_s25 }
 0x58d   :  { %v1820_v23 = vpop.eup %1819 }
 0x58e   :  { %v655_v24 = vadd.f32 1.0, %v1820_v23 }
 0x590   :  { %1821 = vrcp.f32 %v655_v24  ;;  %v667_v35 = vand.u32 2147483648, %v655_v24  ;;  %vm661_vm14 = vweird.f32 %v655_v24  ;;  %v665_v38 = vand.u32 2147483647, %v655_v24 }
 0x592   :  { %v668_v42 = vor.u32 1.1754944e-38, %v667_v35  ;;  %vm666_vm0 = vcmp.eq.f32.partialorder %v665_v38, 8.507059e+37 }
 0x596   :  { %v1822_v26 = vpop.eup %1821 }
 0x597   :  { %v657_v27 = vmul.f32 %v1822_v26, %v655_v24  ;;  %vm662_vm13 = vweird.f32 %v1822_v26 }
 0x598   :  { %vm663_vm15 = vmor %vm661_vm14, %vm662_vm13 }
 0x599   :  { %v658_v30 = vsub.f32 1.0, %v657_v27 }
 0x59b   :  { %v659_v32 = vmul.f32 %v1822_v26, %v658_v30 }
 0x59d   :  { %v660_v33 = vadd.f32 %v1822_v26, %v659_v32 }
 0x59f   :  { %v664_v41 = vsel %vm663_vm15, %v1822_v26, %v660_v33 }
 0x5a0   :  { %v669_v45 = vsel %vm666_vm0, %v668_v42, %v664_v41 }
 0x5a1   :  { %v672_v48 = vmul.f32 0.0, %v669_v45 }
 0x5fe   :  { %v675_v44 = vpop.permute.xlu1 %674 }
 0x5ff   :  { %v677_v46 = vmul.f32 %v675_v44, %v669_v45 }
 0x601   :  { %679 = vrot.lane.b32.xlu2 %v677_v46, %s1927_s26 }
 0x65b   :  { %v680_v43 = vpop.permute.xlu2 %679 }
 0x65c   :  { %v2383_v49 = vadd.f32 %v680_v43, %v672_v48 }
 0x65e   :  { %1823 = vtanh.f32 %v2383_v49 }
 0x664   :  { %v1824_v40 = vpop.eup %1823 }
 0x665   :  { %685 = vrot.lane.b32.xlu2 %v1824_v40, %s1926_s25 }
 0x6bf   :  { %v686_v55 = vpop.permute.xlu2 %685 }
 0x6c0   :  { %v688_v31 = vmul.f32 %v686_v55, %v669_v45 }
 0x6c2   :  { %690 = vrot.lane.b32.xlu1 %v688_v31, %s1928_s19  ;;  %789 = vrot.lane.b32.xlu0 %v688_v31, %s1927_s26 }
 0x734   :  { %v2438_v59 = vpop.permute.xlu1 %690  ;;  %v790_v61 = vpop.permute.xlu0 %789 }
 0x735   :  { %v693_v62 = vsel %vm590_vm11, %v2363_v14, %v2438_v59  ;;  %1737 = vmatmul.msk.f32.vlgmr.msra.gmra.mxu1 %vm478_vm3, %v790_v61 }
 0x736   :  { %v694_v63 = vpack.c.bf16 %v693_v62, %v693_v62 }
 0x738   :  { %1733 = vmatmul.msk.bf16.vlgmr.msrb.gmra.mxu3 %vm635_vm12, %v694_v63 }
 0x739   :  { %1243 = vmatpush.msrb.mxu3 %v2214_v56 }
 0x73b   :  { %1244 = vmatpush.msrb.mxu3 %v2219_v57 }
 0x73d   :  { %1245 = vmatpush.msrb.mxu3 %v2225_v58 }
 0x73f   :  { %1246 = vmatpush.msrb.mxu3 %v2231_v60 }
 0x7b2   :  { %v810_v0 = vpop.f32.mrf.mxu1 }
 0x7b3   :  { %v813_v7 = vperm.slane %v810_v0, 0 }
 0x7b5   :  { %v815_v9 = vadd.f32 %v813_v7, %v2292_v39  ;;  %v814_v11 = vadd.f32 %v813_v7, %v2290_v36 }
 0x7b7   :  { %1825 = vtanh.f32 %v815_v9 }
 0x7b8   :  { %1827 = vtanh.f32 %v814_v11 }
 0x7bb   :  { %v749_v13 = vpop.f32.mrf.mxu3 }
 0x7bc   :  { %v750_v14 = vadd.f32 %v749_v13, %v2454_v12 }
 0x7bd   :  { %v1826_v52 = vpop.eup %1825 }
 0x7be   :  { %753 = vst [vmem:[%s2692_s14] sm:$0x1] %v750_v14  ;;  %v755_v15 = vsel %vm754_vm1, %v750_v14, -inf  ;;  %1738 = vmatpush.xpose.msk.msrb.mxu1 %vm478_vm3, %v1826_v52  ;;  %v1828_v17 = vpop.eup %1827  ;;  %v786_v52 = vstv %s785_s10  ;;  %s1770_s10 = sld [smem:[#allocation3 + $0x4]] }
 0x7bf   :  { %756 = vmax.xlane.f32.xlu0 %v755_v15  ;;  %vm787_vm15 = vcmp.eq.s32.totalorder %v786_v52, 1 }
 0x7c2   :  { %1739 = vmatpush.xpose.msk.msrb.mxu1 %vm478_vm3, %v1828_v17 }
 0x7c3   :  { %v751_v18 = vpop.f32.mrf.mxu3 }
 0x7c5   :  { %1740 = vmatmul.msk.f32.vlgmr.msrb.gmra.mxu1 %vm478_vm3, %v2301_v47 }
 0x7c6   :  { %885 = vmatpush.msra.mxu1 %v2278_v28 }
 0x7c8   :  { %886 = vmatpush.msra.mxu1 %v2275_v25 }
 0x7ca   :  { %1024 = vmatpush.msrb.mxu1 %v2214_v56 }
 0x7cc   :  { %1025 = vmatpush.msrb.mxu1 %v2219_v57 }
 0x7ce   :  { %1026 = vmatpush.msrb.mxu1 %v2225_v58 }
 0x7d0   :  { %1027 = vmatpush.msrb.mxu1 %v2231_v60 }
 0x832   :  { %v757_v19 = vpop.xlane.xlu0 %756 }
 0x833   :  { %vm758_vm2 = vcmp.ge.f32.partialorder %v750_v14, %v757_v19  ;;  %v779_v14 = vstv %s1735_s1 }
 0x834   :  { %v759_v20 = vsel %vm758_vm2, %v2356_v10, 128  ;;  %vm780_vm14 = vcmp.eq.s32.totalorder %v2356_v10, %v779_v14 }
 0x835   :  { %v760_v23 = vsel %vm754_vm1, %v759_v20, 2147483647  ;;  %v1736_v17 = vsel %vm780_vm14, 1.0, %v1924_v22 }
 0x836   :  { %v762_v26 = vshra.s32 %v760_v23, 16  ;;  %v761_v32 = vand.u32 65535, %v760_v23 }
 0x838   :  { %v764_v27 = vcvt.s32.f32 %v762_v26  ;;  %v763_v60 = vcvt.s32.f32 %v761_v32 }
 0x842   :  { %v841_v21 = vpop.f32.mrf.mxu1 }
 0x843   :  { %v844_v24 = vsel %vm536_vm4, %v841_v21, -inf }
 0x844   :  { %845 = vmax.xlane.f32.xlu2 %v844_v24 }
 0x84c   :  { %765 = vmin.xlane.f32.xlu2 %v764_v27 }
 0x8b7   :  { %v846_v56 = vpop.xlane.xlu2 %845 }
 0x8b8   :  { %v847_v30 = vsub.f32 %v841_v21, %v846_v56 }
 0x8ba   :  { %v848_v57 = vmul.f32 1.442695, %v847_v30 }
 0x8bc   :  { %1829 = vpow2.f32 %v848_v57 }
 0x8bf   :  { %v766_v58 = vpop.xlane.xlu2 %765 }
 0x8c0   :  { %vm767_vm5 = vcmp.eq.f32.partialorder %v764_v27, %v766_v58  ;;  %v772_v7 = vcvt.f32.s32 %v766_v58 }
 0x8c1   :  { %v768_v33 = vsel %vm767_vm5, %v763_v60, inf }
 0x8c2   :  { %v1830_v35 = vpop.eup %1829  ;;  %769 = vmin.xlane.f32.xlu2 %v768_v33  ;;  %v773_v11 = vshll.u32 %v772_v7, 16 }
 0x8c3   :  { %v850_v38 = vsel %vm536_vm4, %v1830_v35, 0.0 }
 0x8c4   :  { %851 = vadd.xlane.f32.xlu1 %v850_v38 }
 0x935   :  { %v770_v0 = vpop.xlane.xlu2 %769 }
 0x936   :  { %v771_v9 = vcvt.f32.s32 %v770_v0 }
 0x937   :  { %v852_v41 = vpop.xlane.xlu1 %851 }
 0x938   :  { %1831 = vrcp.f32 %v852_v41  ;;  %v864_v46 = vand.u32 2147483648, %v852_v41  ;;  %v862_v43 = vand.u32 2147483647, %v852_v41  ;;  %vm858_vm7 = vweird.f32 %v852_v41 }
 0x939   :  { %v774_v13 = vadd.s32 %v773_v11, %v771_v9 }
 0x93a   :  { %v865_v55 = vor.u32 1.1754944e-38, %v864_v46  ;;  %vm863_vm10 = vcmp.eq.f32.partialorder %v862_v43, 8.507059e+37 }
 0x93b   :  { %vm775_vm13 = vcmp.eq.s32.totalorder %v2356_v10, %v774_v13 }
 0x93c   :  { %v1734_v15 = vsel %vm775_vm13, 1.0, %v1924_v22 }
 0x93d   :  { %v788_v19 = vsel %vm787_vm15, %v1736_v17, %v1734_v15 }
 0x93e   :  { %v1832_v42 = vpop.eup %1831 }
 0x93f   :  { %v854_v44 = vmul.f32 %v1832_v42, %v852_v41  ;;  %vm859_vm6 = vweird.f32 %v1832_v42 }
 0x940   :  { %vm860_vm8 = vmor %vm858_vm7, %vm859_vm6 }
 0x941   :  { %v855_v45 = vsub.f32 1.0, %v854_v44 }
 0x943   :  { %v856_v48 = vmul.f32 %v1832_v42, %v855_v45 }
 0x945   :  { %v857_v40 = vadd.f32 %v1832_v42, %v856_v48 }
 0x947   :  { %v861_v31 = vsel %vm860_vm8, %v1832_v42, %v857_v40 }
 0x948   :  { %v866_v61 = vsel %vm863_vm10, %v865_v55, %v861_v31 }
 0x949   :  { %v867_v62 = vmul.f32 %v1830_v35, %v866_v61 }
 0x94b   :  { %1741 = vmatmul.msk.f32.vlgmr.msra.gmra.mxu1 %vm561_vm9, %v867_v62 }
 0x9c8   :  { %v888_v63 = vpop.f32.mrf.mxu1 }
 0x9c9   :  { %892 = vrot.lane.b32.xlu1 %v888_v63, %s1925_s22 }
 0xa3b   :  { %v893_v18 = vpop.permute.xlu1 %892 }
 0xa3c   :  { %v895_v20 = vsel %vm561_vm9, %v788_v19, %v893_v18 }
 0xa3d   :  { %v896_v21 = vsel %vm590_vm11, %v895_v20, %v2438_v59 }
 0xa3e   :  { %v897_v23 = vpack.c.bf16 %v896_v21, %v896_v21 }
 0xa40   :  { %1742 = vmatmul.msk.bf16.vlgmr.msrb.gmra.mxu2 %vm635_vm12, %v897_v23 }
 0xa41   :  { %1340 = vmatpush.bf16.msrb.mxu2 %v2311_v1 }
 0xa45   :  { %1341 = vmatpush.bf16.msrb.mxu2 %v2317_v2 }
 0xa49   :  { %1342 = vmatpush.bf16.msrb.mxu2 %v2323_v3 }
 0xa4d   :  { %1343 = vmatpush.bf16.msrb.mxu2 %v2329_v4 }
 0xa51   :  { %1344 = vmatpush.bf16.msrb.mxu2 %v2335_v5 }
 0xa55   :  { %1345 = vmatpush.bf16.msrb.mxu2 %v2341_v6 }
 0xa59   :  { %1346 = vmatpush.bf16.msrb.mxu2 %v2348_v8 }
 0xac3   :  { %v910_v24 = vpop.f32.mrf.mxu2 }
 0xac4   :  { %v911_v59 = vadd.f32 %v910_v24, %v2378_v16 }
 0xac6   :  { %1833 = vtanh.f32 %v911_v59  ;;  %v1743_v56 = vmul.f32 -1.442695, %v911_v59 }
 0xac8   :  { %1835 = vpow2.f32 %v1743_v56 }
 0xacb   :  { %v912_v26 = vpop.f32.mrf.mxu2 }
 0xacc   :  { %v1834_v27 = vpop.eup %1833 }
 0xacd   :  { %936 = vrot.lane.b32.xlu2 %v1834_v27, %s1926_s25 }
 0xace   :  { %v1836_v30 = vpop.eup %1835 }
 0xacf   :  { %v917_v57 = vadd.f32 1.0, %v1836_v30 }
 0xad1   :  { %1837 = vrcp.f32 %v917_v57  ;;  %v929_v38 = vand.u32 2147483648, %v917_v57  ;;  %vm923_vm2 = vweird.f32 %v917_v57  ;;  %v927_v41 = vand.u32 2147483647, %v917_v57 }
 0xad3   :  { %v930_v44 = vor.u32 1.1754944e-38, %v929_v38  ;;  %vm928_vm6 = vcmp.eq.f32.partialorder %v927_v41, 8.507059e+37 }
 0xad7   :  { %v1838_v32 = vpop.eup %1837 }
 0xad8   :  { %v919_v58 = vmul.f32 %v1838_v32, %v917_v57  ;;  %vm924_vm0 = vweird.f32 %v1838_v32 }
 0xad9   :  { %vm925_vm5 = vmor %vm923_vm2, %vm924_vm0 }
 0xada   :  { %v920_v60 = vsub.f32 1.0, %v919_v58 }
 0xadc   :  { %v921_v33 = vmul.f32 %v1838_v32, %v920_v60 }
 0xade   :  { %v922_v35 = vadd.f32 %v1838_v32, %v921_v33 }
 0xae0   :  { %v926_v42 = vsel %vm925_vm5, %v1838_v32, %v922_v35 }
 0xae1   :  { %v931_v46 = vsel %vm928_vm6, %v930_v44, %v926_v42 }
 0xae2   :  { %v934_v43 = vmul.f32 %v931_v46, %v2383_v49 }
 0xb27   :  { %v937_v45 = vpop.permute.xlu2 %936 }
 0xb28   :  { %v939_v48 = vmul.f32 %v937_v45, %v931_v46 }
 0xb2a   :  { %941 = vrot.lane.b32.xlu0 %v939_v48, %s1927_s26 }
 0xb9c   :  { %v942_v40 = vpop.permute.xlu0 %941 }
 0xb9d   :  { %v2496_v55 = vadd.f32 %v942_v40, %v934_v43 }
 0xb9f   :  { %1839 = vtanh.f32 %v2496_v55 }
 0xba5   :  { %v1840_v31 = vpop.eup %1839 }
 0xba6   :  { %947 = vrot.lane.b32.xlu1 %v1840_v31, %s1926_s25 }
 0xc18   :  { %v948_v61 = vpop.permute.xlu1 %947 }
 0xc19   :  { %v950_v62 = vmul.f32 %v948_v61, %v931_v46 }
 0xc1b   :  { %952 = vrot.lane.b32.xlu0 %v950_v62, %s1928_s19  ;;  %1008 = vrot.lane.b32.xlu2 %v950_v62, %s1927_s26 }
 0xc75   :  { %v1009_v63 = vpop.permute.xlu2 %1008 }
 0xc76   :  { %1749 = vmatmul.msk.f32.vlgmr.msrb.gmra.mxu1 %vm478_vm3, %v1009_v63 }
 0xc8d   :  { %v2503_v0 = vpop.permute.xlu0 %952 }
 0xc8e   :  { %v955_v49 = vsel %vm590_vm11, %v895_v20, %v2503_v0 }
 0xc8f   :  { %v956_v7 = vpack.c.bf16 %v955_v49, %v955_v49 }
 0xc91   :  { %1744 = vmatmul.msk.bf16.vlgmr.msra.gmra.mxu3 %vm635_vm12, %v956_v7 }
 0xcf3   :  { %v1029_v9 = vpop.f32.mrf.mxu1 }
 0xcf4   :  { %v1032_v11 = vperm.slane %v1029_v9, 0 }
 0xcf6   :  { %v1034_v13 = vadd.f32 %v1032_v11, %v2292_v39  ;;  %v1033_v14 = vadd.f32 %v1032_v11, %v2290_v36 }
 0xcf8   :  { %1841 = vtanh.f32 %v1034_v13 }
 0xcf9   :  { %1843 = vtanh.f32 %v1033_v14 }
 0xcfe   :  { %v1842_v52 = vpop.eup %1841 }
 0xcff   :  { %1750 = vmatpush.xpose.msk.msra.mxu1 %vm478_vm3, %v1842_v52  ;;  %v1844_v15 = vpop.eup %1843 }
 0xd03   :  { %1751 = vmatpush.xpose.msk.msra.mxu1 %vm478_vm3, %v1844_v15  ;;  %v998_v15 = vstv %s1746_s27 }
 0xd04   :  { %vm999_vm2 = vcmp.eq.s32.totalorder %v2356_v10, %v998_v15 }
 0xd06   :  { %1752 = vmatmul.msk.f32.vlgmr.msra.gmra.mxu1 %vm478_vm3, %v2301_v47 }
 0xd07   :  { %1104 = vmatpush.msrb.mxu1 %v2278_v28 }
 0xd09   :  { %1105 = vmatpush.msrb.mxu1 %v2275_v25 }
 0xd0b   :  { %1180 = vmatpush.bf16.msra.mxu1 %v2390_v50 }
 0xd0f   :  { %1181 = vmatpush.bf16.msra.mxu1 %v2396_v51 }
 0xd13   :  { %1182 = vmatpush.bf16.msra.mxu1 %v2402_v37 }
 0xd14   :  { %v969_v17 = vpop.f32.mrf.mxu3 }
 0xd15   :  { %v970_v18 = vadd.f32 %v969_v17, %v2454_v12  ;;  %v1005_v17 = vstv %s1004_s8 }
 0xd16   :  { %vm1006_vm5 = vcmp.eq.s32.totalorder %v1005_v17, 1 }
 0xd17   :  { %1183 = vmatpush.bf16.msra.mxu1 %v2408_v53  ;;  %973 = vst [vmem:[%s2692_s14 + $0x1] sm:$0x1] %v970_v18  ;;  %v974_v19 = vsel %vm754_vm1, %v970_v18, -inf }
 0xd18   :  { %975 = vmax.xlane.f32.xlu0 %v974_v19  ;;  %v1747_v19 = vsel %vm999_vm2, 1.0, %v1924_v22 }
 0xd1b   :  { %1184 = vmatpush.bf16.msra.mxu1 %v2414_v54 }
 0xd1c   :  { %v971_v20 = vpop.f32.mrf.mxu3 }
 0xd1f   :  { %1185 = vmatpush.bf16.msra.mxu1 %v2420_v34 }
 0xd23   :  { %1186 = vmatpush.bf16.msra.mxu1 %v2428_v29 }
 0xd83   :  { %v1060_v21 = vpop.f32.mrf.mxu1 }
 0xd84   :  { %v1063_v23 = vsel %vm536_vm4, %v1060_v21, -inf }
 0xd85   :  { %1064 = vmax.xlane.f32.xlu1 %v1063_v23 }
 0xd8b   :  { %v976_v24 = vpop.xlane.xlu0 %975 }
 0xd8c   :  { %vm977_vm7 = vcmp.ge.f32.partialorder %v970_v18, %v976_v24 }
 0xd8d   :  { %v978_v59 = vsel %vm977_vm7, %v2356_v10, 128 }
 0xd8e   :  { %v979_v26 = vsel %vm754_vm1, %v978_v59, 2147483647 }
 0xd8f   :  { %v981_v27 = vshra.s32 %v979_v26, 16  ;;  %v980_v35 = vand.u32 65535, %v979_v26 }
 0xd91   :  { %v983_v56 = vcvt.s32.f32 %v981_v27  ;;  %v982_v38 = vcvt.s32.f32 %v980_v35 }
 0xd93   :  { %984 = vmin.xlane.f32.xlu1 %v983_v56 }
 0xdf8   :  { %v1065_v30 = vpop.xlane.xlu1 %1064 }
 0xdf9   :  { %v1066_v57 = vsub.f32 %v1060_v21, %v1065_v30 }
 0xdfb   :  { %v1067_v32 = vmul.f32 1.442695, %v1066_v57 }
 0xdfd   :  { %1845 = vpow2.f32 %v1067_v32 }
 0xe03   :  { %v1846_v58 = vpop.eup %1845 }
 0xe04   :  { %v1069_v60 = vsel %vm536_vm4, %v1846_v58, 0.0 }
 0xe05   :  { %1070 = vadd.xlane.f32.xlu2 %v1069_v60 }
 0xe06   :  { %v985_v33 = vpop.xlane.xlu1 %984 }
 0xe07   :  { %vm986_vm8 = vcmp.eq.f32.partialorder %v983_v56, %v985_v33  ;;  %v991_v11 = vcvt.f32.s32 %v985_v33 }
 0xe08   :  { %v987_v41 = vsel %vm986_vm8, %v982_v38, inf }
 0xe09   :  { %v992_v14 = vshll.u32 %v991_v11, 16 }
 0xe0d   :  { %988 = vmin.xlane.f32.xlu2 %v987_v41 }
 0xe78   :  { %v1071_v42 = vpop.xlane.xlu2 %1070 }
 0xe79   :  { %1847 = vrcp.f32 %v1071_v42  ;;  %v1083_v48 = vand.u32 2147483648, %v1071_v42  ;;  %v1081_v40 = vand.u32 2147483647, %v1071_v42  ;;  %vm1077_vm13 = vweird.f32 %v1071_v42 }
 0xe7b   :  { %v1084_v61 = vor.u32 1.1754944e-38, %v1083_v48  ;;  %vm1082_vm15 = vcmp.eq.f32.partialorder %v1081_v40, 8.507059e+37 }
 0xe7f   :  { %v1848_v44 = vpop.eup %1847 }
 0xe80   :  { %v1073_v45 = vmul.f32 %v1848_v44, %v1071_v42  ;;  %vm1078_vm10 = vweird.f32 %v1848_v44  ;;  %v989_v9 = vpop.xlane.xlu2 %988 }
 0xe81   :  { %vm1079_vm14 = vmor %vm1077_vm13, %vm1078_vm10  ;;  %v990_v13 = vcvt.f32.s32 %v989_v9  ;;  %v1891_v9 = vld [vmem:[%s2685_s7 + $0x8] sm:$0xff] }
 0xe82   :  { %v1074_v46 = vsub.f32 1.0, %v1073_v45 }
 0xe83   :  { %v993_v52 = vadd.s32 %v992_v14, %v990_v13 }
 0xe84   :  { %v1075_v43 = vmul.f32 %v1848_v44, %v1074_v46 }
 0xe85   :  { %vm994_vm0 = vcmp.eq.s32.totalorder %v2356_v10, %v993_v52 }
 0xe86   :  { %v1076_v31 = vadd.f32 %v1848_v44, %v1075_v43  ;;  %v1745_v18 = vsel %vm994_vm0, 1.0, %v1924_v22 }
 0xe87   :  { %v1007_v21 = vsel %vm1006_vm5, %v1747_v19, %v1745_v18 }
 0xe88   :  { %v1080_v62 = vsel %vm1079_vm14, %v1848_v44, %v1076_v31 }
 0xe89   :  { %v1085_v63 = vsel %vm1082_vm15, %v1084_v61, %v1080_v62 }
 0xe8a   :  { %v1086_v49 = vmul.f32 %v1846_v58, %v1085_v63 }
 0xe8c   :  { %1753 = vmatmul.msk.f32.vlgmr.msrb.gmra.mxu1 %vm561_vm9, %v1086_v49  ;;  %v1889_v49 = vld [vmem:[%s2685_s7 + $0x18] sm:$0xff] }
 0xe8d   :  { %1399 = vmatpush.bf16.msrb.mxu1 %v2390_v50 }
 0xe91   :  { %1400 = vmatpush.bf16.msrb.mxu1 %v2396_v51 }
 0xe95   :  { %1401 = vmatpush.bf16.msrb.mxu1 %v2402_v37 }
 0xe99   :  { %1402 = vmatpush.bf16.msrb.mxu1 %v2408_v53 }
 0xe9d   :  { %1403 = vmatpush.bf16.msrb.mxu1 %v2414_v54 }
 0xea1   :  { %1404 = vmatpush.bf16.msrb.mxu1 %v2420_v34 }
 0xea5   :  { %1405 = vmatpush.bf16.msrb.mxu1 %v2428_v29 }
 0xf09   :  { %v1107_v7 = vpop.f32.mrf.mxu1 }
 0xf0a   :  { %1111 = vrot.lane.b32.xlu0 %v1107_v7, %s1925_s22  ;;  %v1890_v7 = vld [vmem:[%s2685_s7 + $0x10] sm:$0xff] }
 0xf7c   :  { %v1112_v20 = vpop.permute.xlu0 %1111 }
 0xf7d   :  { %v1114_v23 = vsel %vm561_vm9, %v1007_v21, %v1112_v20 }
 0xf7e   :  { %v1115_v24 = vsel %vm590_vm11, %v1114_v23, %v2503_v0 }
 0xf7f   :  { %v1116_v59 = vpack.c.bf16 %v1115_v24, %v1115_v24 }
 0xf81   :  { %1754 = vmatmul.msk.bf16.vlgmr.msra.gmra.mxu2 %vm635_vm12, %v1116_v59 }
 0xf82   :  { %1559 = vmatpush.bf16.msra.mxu2 %v2311_v1 }
 0xf86   :  { %1560 = vmatpush.bf16.msra.mxu2 %v2317_v2 }
 0xf8a   :  { %1561 = vmatpush.bf16.msra.mxu2 %v2323_v3 }
 0xf8e   :  { %1562 = vmatpush.bf16.msra.mxu2 %v2329_v4 }
 0xf92   :  { %1563 = vmatpush.bf16.msra.mxu2 %v2335_v5 }
 0xf96   :  { %1564 = vmatpush.bf16.msra.mxu2 %v2341_v6 }
 0xf9a   :  { %1565 = vmatpush.bf16.msra.mxu2 %v2348_v8 }
0x1004   :  { %v1129_v26 = vpop.f32.mrf.mxu2 }
0x1005   :  { %v1130_v0 = vadd.f32 %v1129_v26, %v2378_v16 }
0x1007   :  { %1849 = vtanh.f32 %v1130_v0  ;;  %v1755_v1 = vmul.f32 -1.442695, %v1130_v0 }
0x1009   :  { %1851 = vpow2.f32 %v1755_v1 }
0x100c   :  { %v1131_v27 = vpop.f32.mrf.mxu2 }
0x100d   :  { %v1850_v56 = vpop.eup %1849 }
0x100e   :  { %1155 = vrot.lane.b32.xlu1 %v1850_v56, %s1926_s25 }
0x100f   :  { %v1852_v2 = vpop.eup %1851 }
0x1010   :  { %v1136_v3 = vadd.f32 1.0, %v1852_v2 }
0x1012   :  { %1853 = vrcp.f32 %v1136_v3  ;;  %v1148_v8 = vand.u32 2147483648, %v1136_v3  ;;  %vm1142_vm7 = vweird.f32 %v1136_v3  ;;  %v1146_v32 = vand.u32 2147483647, %v1136_v3 }
0x1014   :  { %v1149_v60 = vor.u32 1.1754944e-38, %v1148_v8  ;;  %vm1147_vm10 = vcmp.eq.f32.partialorder %v1146_v32, 8.507059e+37 }
0x1018   :  { %v1854_v4 = vpop.eup %1853 }
0x1019   :  { %v1138_v30 = vmul.f32 %v1854_v4, %v1136_v3  ;;  %vm1143_vm6 = vweird.f32 %v1854_v4 }
0x101a   :  { %vm1144_vm8 = vmor %vm1142_vm7, %vm1143_vm6 }
0x101b   :  { %v1139_v5 = vsub.f32 1.0, %v1138_v30 }
0x101d   :  { %v1140_v57 = vmul.f32 %v1854_v4, %v1139_v5 }
0x101f   :  { %v1141_v6 = vadd.f32 %v1854_v4, %v1140_v57 }
0x1021   :  { %v1145_v58 = vsel %vm1144_vm8, %v1854_v4, %v1141_v6 }
0x1022   :  { %v1150_v35 = vsel %vm1147_vm10, %v1149_v60, %v1145_v58 }
0x1023   :  { %v1153_v41 = vmul.f32 %v1150_v35, %v2496_v55 }
0x1080   :  { %v1156_v33 = vpop.permute.xlu1 %1155 }
0x1081   :  { %v1158_v38 = vmul.f32 %v1156_v33, %v1150_v35 }
0x1083   :  { %1160 = vrot.lane.b32.xlu2 %v1158_v38, %s1927_s26 }
0x10dd   :  { %v1161_v42 = vpop.permute.xlu2 %1160 }
0x10de   :  { %v2560_v44 = vadd.f32 %v1161_v42, %v1153_v41 }
0x10e0   :  { %1855 = vtanh.f32 %v2560_v44 }
0x10e6   :  { %v1856_v45 = vpop.eup %1855 }
0x10e7   :  { %1166 = vrot.lane.b32.xlu0 %v1856_v45, %s1926_s25  ;;  %v1217_v45 = vstv %s1758_s12 }
0x10e8   :  { %vm1218_vm7 = vcmp.eq.s32.totalorder %v2356_v10, %v1217_v45 }
0x1159   :  { %v1167_v46 = vpop.permute.xlu0 %1166 }
0x115a   :  { %v1169_v48 = vmul.f32 %v1167_v46, %v1150_v35 }
0x115c   :  { %1171 = vrot.lane.b32.xlu0 %v1169_v48, %s1928_s19  ;;  %1227 = vrot.lane.b32.xlu1 %v1169_v48, %s1927_s26 }
0x11ce   :  { %v2566_v43 = vpop.permute.xlu0 %1171  ;;  %v1228_v40 = vpop.permute.xlu1 %1227 }
0x11cf   :  { %v1174_v55 = vsel %vm590_vm11, %v1114_v23, %v2566_v43  ;;  %1761 = vmatmul.msk.f32.vlgmr.msrb.gmra.mxu3 %vm478_vm3, %v1228_v40  ;;  %v1759_v40 = vsel %vm1218_vm7, 1.0, %v1924_v22 }
0x11d0   :  { %v1175_v31 = vpack.c.bf16 %v1174_v55, %v1174_v55 }
0x11d2   :  { %1756 = vmatmul.msk.bf16.vlgmr.msra.gmra.mxu1 %vm635_vm12, %v1175_v31 }
0x11d3   :  { %1618 = vmatpush.bf16.msra.mxu1 %v2390_v50 }
0x11d7   :  { %1619 = vmatpush.bf16.msra.mxu1 %v2396_v51 }
0x11db   :  { %1620 = vmatpush.bf16.msra.mxu1 %v2402_v37 }
0x11df   :  { %1621 = vmatpush.bf16.msra.mxu1 %v2408_v53 }
0x11e3   :  { %1622 = vmatpush.bf16.msra.mxu1 %v2414_v54 }
0x11e7   :  { %1623 = vmatpush.bf16.msra.mxu1 %v2420_v34 }
0x11eb   :  { %1624 = vmatpush.bf16.msra.mxu1 %v2428_v29 }
0x124f   :  { %v1188_v61 = vpop.f32.mrf.mxu1 }
0x1250   :  { %v1189_v62 = vadd.f32 %v1188_v61, %v2454_v12 }
0x1252   :  { %1192 = vst [vmem:[%s2692_s14 + $0x2] sm:$0x1] %v1189_v62  ;;  %v1248_v50 = vpop.f32.mrf.mxu3  ;;  %v1193_v51 = vsel %vm754_vm1, %v1189_v62, -inf }
0x1253   :  { %v1251_v63 = vperm.slane %v1248_v50, 0  ;;  %1194 = vmax.xlane.f32.xlu0 %v1193_v51 }
0x1255   :  { %v1253_v37 = vadd.f32 %v1251_v63, %v2292_v39  ;;  %v1252_v54 = vadd.f32 %v1251_v63, %v2290_v36 }
0x1257   :  { %v1190_v53 = vpop.f32.mrf.mxu1  ;;  %1857 = vtanh.f32 %v1253_v37 }
0x1258   :  { %1859 = vtanh.f32 %v1252_v54 }
0x125d   :  { %v1858_v34 = vpop.eup %1857 }
0x125e   :  { %1762 = vmatpush.xpose.msk.msra.mxu3 %vm478_vm3, %v1858_v34  ;;  %v1860_v29 = vpop.eup %1859 }
0x1262   :  { %1763 = vmatpush.xpose.msk.msra.mxu3 %vm478_vm3, %v1860_v29 }
0x1265   :  { %1764 = vmatmul.msk.f32.vlgmr.msra.gmra.mxu3 %vm478_vm3, %v2301_v47  ;;  %v1892_v47 = vld [vmem:[%s2685_s7] sm:$0xff]  ;;  %s1760_s7 = sld [smem:[#allocation4 + $0x2]] }
0x1266   :  { %1323 = vmatpush.msrb.mxu3 %v2278_v28 }
0x1268   :  { %1324 = vmatpush.msrb.mxu3 %v2275_v25 }
0x126a   :  { %1462 = vmatpush.msra.mxu3 %v1889_v49 }
0x126b   :  { %p1222_p2 = scmp.ne.s32.totalorder %s1760_s7, 0 }
0x126c   :  { %1463 = vmatpush.msra.mxu3 %v1890_v7 }
0x126d   :  { %s1223_s4 = scalar_select %p1222_p2, 1, 0 }
0x126e   :  { %1464 = vmatpush.msra.mxu3 %v1891_v9 }
0x126f   :  { %v1224_v46 = vstv %s1223_s4 }
0x1270   :  { %1465 = vmatpush.msra.mxu3 %v1892_v47  ;;  %vm1225_vm8 = vcmp.eq.s32.totalorder %v1224_v46, 1 }
0x12c6   :  { %v1195_v11 = vpop.xlane.xlu0 %1194 }
0x12c7   :  { %vm1196_vm13 = vcmp.ge.f32.partialorder %v1189_v62, %v1195_v11 }
0x12c8   :  { %v1197_v13 = vsel %vm1196_vm13, %v2356_v10, 128 }
0x12c9   :  { %v1198_v52 = vsel %vm754_vm1, %v1197_v13, 2147483647 }
0x12ca   :  { %v1200_v17 = vshra.s32 %v1198_v52, 16  ;;  %v1199_v26 = vand.u32 65535, %v1198_v52 }
0x12cc   :  { %v1202_v18 = vcvt.s32.f32 %v1200_v17  ;;  %v1201_v0 = vcvt.s32.f32 %v1199_v26 }
0x12e8   :  { %v1279_v14 = vpop.f32.mrf.mxu3 }
0x12e9   :  { %v1282_v15 = vsel %vm536_vm4, %v1279_v14, -inf }
0x12ea   :  { %1283 = vmax.xlane.f32.xlu2 %v1282_v15 }
0x12f2   :  { %1203 = vmin.xlane.f32.xlu2 %v1202_v18 }
0x135d   :  { %v1284_v19 = vpop.xlane.xlu2 %1283 }
0x135e   :  { %v1285_v20 = vsub.f32 %v1279_v14, %v1284_v19 }
0x1360   :  { %v1286_v21 = vmul.f32 1.442695, %v1285_v20 }
0x1362   :  { %1861 = vpow2.f32 %v1286_v21 }
0x1365   :  { %v1204_v59 = vpop.xlane.xlu2 %1203 }
0x1366   :  { %vm1205_vm14 = vcmp.eq.f32.partialorder %v1202_v18, %v1204_v59  ;;  %v1210_v35 = vcvt.f32.s32 %v1204_v59 }
0x1367   :  { %v1206_v27 = vsel %vm1205_vm14, %v1201_v0, inf }
0x1368   :  { %v1862_v23 = vpop.eup %1861  ;;  %v1211_v41 = vshll.u32 %v1210_v35, 16 }
0x1369   :  { %v1288_v24 = vsel %vm536_vm4, %v1862_v23, 0.0 }
0x136a   :  { %1289 = vadd.xlane.f32.xlu1 %v1288_v24 }
0x1372   :  { %1207 = vmin.xlane.f32.xlu1 %v1206_v27 }
0x13dd   :  { %v1290_v56 = vpop.xlane.xlu1 %1289 }
0x13de   :  { %1863 = vrcp.f32 %v1290_v56  ;;  %v1302_v4 = vand.u32 2147483648, %v1290_v56  ;;  %v1300_v5 = vand.u32 2147483647, %v1290_v56  ;;  %vm1296_vm0 = vweird.f32 %v1290_v56 }
0x13e0   :  { %v1303_v6 = vor.u32 1.1754944e-38, %v1302_v4  ;;  %vm1301_vm5 = vcmp.eq.f32.partialorder %v1300_v5, 8.507059e+37 }
0x13e4   :  { %v1864_v1 = vpop.eup %1863 }
0x13e5   :  { %v1292_v2 = vmul.f32 %v1864_v1, %v1290_v56  ;;  %vm1297_vm15 = vweird.f32 %v1864_v1  ;;  %v1208_v33 = vpop.xlane.xlu1 %1207 }
0x13e6   :  { %vm1298_vm2 = vmor %vm1296_vm0, %vm1297_vm15  ;;  %v1209_v38 = vcvt.f32.s32 %v1208_v33 }
0x13e7   :  { %v1293_v3 = vsub.f32 1.0, %v1292_v2 }
0x13e8   :  { %v1212_v42 = vadd.s32 %v1211_v41, %v1209_v38 }
0x13e9   :  { %v1294_v30 = vmul.f32 %v1864_v1, %v1293_v3 }
0x13ea   :  { %vm1213_vm6 = vcmp.eq.s32.totalorder %v2356_v10, %v1212_v42 }
0x13eb   :  { %v1295_v57 = vadd.f32 %v1864_v1, %v1294_v30  ;;  %v1757_v48 = vsel %vm1213_vm6, 1.0, %v1924_v22  ;;  %v1893_v30 = vld [vmem:[%s2687_s9] sm:$0x1]  ;;  %s1772_s9 = sld [smem:[#allocation4 + $0x3]] }
0x13ec   :  { %v1226_v31 = vsel %vm1225_vm8, %v1759_v40, %v1757_v48 }
0x13ed   :  { %v1299_v8 = vsel %vm1298_vm2, %v1864_v1, %v1295_v57 }
0x13ee   :  { %v1304_v32 = vsel %vm1301_vm5, %v1303_v6, %v1299_v8 }
0x13ef   :  { %v1305_v58 = vmul.f32 %v1862_v23, %v1304_v32 }
0x13f1   :  { %1765 = vmatmul.msk.f32.vlgmr.msrb.gmra.mxu3 %vm561_vm9, %v1305_v58  ;;  %p1441_p3 = scmp.ne.s32.totalorder %s1772_s9, 0 }
0x13f3   :  { %s1442_s24 = scalar_select %p1441_p3, 1, 0 }
0x1474   :  { %v1326_v60 = vpop.f32.mrf.mxu3 }
0x1475   :  { %1330 = vrot.lane.b32.xlu0 %v1326_v60, %s1925_s22 }
0x14e7   :  { %v1331_v55 = vpop.permute.xlu0 %1330 }
0x14e8   :  { %v1333_v61 = vsel %vm561_vm9, %v1226_v31, %v1331_v55 }
0x14e9   :  { %v1334_v62 = vsel %vm590_vm11, %v1333_v61, %v2566_v43 }
0x14ea   :  { %v1335_v50 = vpack.c.bf16 %v1334_v62, %v1334_v62 }
0x14ec   :  { %1766 = vmatmul.msk.bf16.vlgmr.msrb.gmra.mxu2 %vm635_vm12, %v1335_v50 }
0x156f   :  { %v1348_v51 = vpop.f32.mrf.mxu2 }
0x1570   :  { %v1349_v63 = vadd.f32 %v1348_v51, %v2378_v16 }
0x1572   :  { %1865 = vtanh.f32 %v1349_v63  ;;  %v1767_v54 = vmul.f32 -1.442695, %v1349_v63 }
0x1574   :  { %1867 = vpow2.f32 %v1767_v54 }
0x1577   :  { %v1350_v37 = vpop.f32.mrf.mxu2 }
0x1578   :  { %v1866_v53 = vpop.eup %1865 }
0x1579   :  { %1374 = vrot.lane.b32.xlu2 %v1866_v53, %s1926_s25 }
0x157a   :  { %v1868_v34 = vpop.eup %1867 }
0x157b   :  { %v1355_v29 = vadd.f32 1.0, %v1868_v34 }
0x157d   :  { %1869 = vrcp.f32 %v1355_v29  ;;  %v1367_v11 = vand.u32 2147483648, %v1355_v29  ;;  %vm1361_vm13 = vweird.f32 %v1355_v29  ;;  %v1365_v13 = vand.u32 2147483647, %v1355_v29 }
0x157f   :  { %v1368_v14 = vor.u32 1.1754944e-38, %v1367_v11  ;;  %vm1366_vm15 = vcmp.eq.f32.partialorder %v1365_v13, 8.507059e+37  ;;  %v1436_v11 = vstv %s1770_s10  ;;  %v1443_v13 = vstv %s1442_s24 }
0x1580   :  { %vm1437_vm7 = vcmp.eq.s32.totalorder %v2356_v10, %v1436_v11  ;;  %vm1444_vm8 = vcmp.eq.s32.totalorder %v1443_v13, 1 }
0x1583   :  { %v1870_v49 = vpop.eup %1869 }
0x1584   :  { %v1357_v7 = vmul.f32 %v1870_v49, %v1355_v29  ;;  %vm1362_vm10 = vweird.f32 %v1870_v49 }
0x1585   :  { %vm1363_vm14 = vmor %vm1361_vm13, %vm1362_vm10 }
0x1586   :  { %v1358_v9 = vsub.f32 1.0, %v1357_v7 }
0x1588   :  { %v1359_v43 = vmul.f32 %v1870_v49, %v1358_v9 }
0x158a   :  { %v1360_v47 = vadd.f32 %v1870_v49, %v1359_v43 }
0x158c   :  { %v1364_v16 = vsel %vm1363_vm14, %v1870_v49, %v1360_v47 }
0x158d   :  { %v1369_v15 = vsel %vm1366_vm15, %v1368_v14, %v1364_v16  ;;  %v1771_v14 = vsel %vm1437_vm7, 1.0, %v1924_v22 }
0x158e   :  { %v1372_v18 = vmul.f32 %v1369_v15, %v2560_v44 }
0x15d3   :  { %v1375_v52 = vpop.permute.xlu2 %1374 }
0x15d4   :  { %v1377_v17 = vmul.f32 %v1375_v52, %v1369_v15 }
0x15d6   :  { %1379 = vrot.lane.b32.xlu1 %v1377_v17, %s1927_s26 }
0x1648   :  { %v1380_v19 = vpop.permute.xlu1 %1379 }
0x1649   :  { %v2622_v20 = vadd.f32 %v1380_v19, %v1372_v18 }
0x164b   :  { %1871 = vtanh.f32 %v2622_v20 }
0x1651   :  { %v1872_v21 = vpop.eup %1871 }
0x1652   :  { %1385 = vrot.lane.b32.xlu0 %v1872_v21, %s1926_s25 }
0x16c4   :  { %v1386_v23 = vpop.permute.xlu0 %1385 }
0x16c5   :  { %v1388_v24 = vmul.f32 %v1386_v23, %v1369_v15 }
0x16c7   :  { %1390 = vrot.lane.b32.xlu0 %v1388_v24, %s1928_s19  ;;  %1446 = vrot.lane.b32.xlu2 %v1388_v24, %s1927_s26 }
0x1721   :  { %v1447_v59 = vpop.permute.xlu2 %1446 }
0x1722   :  { %1773 = vmatmul.msk.f32.vlgmr.msra.gmra.mxu3 %vm478_vm3, %v1447_v59 }
0x1739   :  { %v2629_v26 = vpop.permute.xlu0 %1390 }
0x173a   :  { %v1393_v44 = vsel %vm590_vm11, %v1333_v61, %v2629_v26 }
0x173b   :  { %v1394_v0 = vpack.c.bf16 %v1393_v44, %v1393_v44 }
0x173d   :  { %1768 = vmatmul.msk.bf16.vlgmr.msrb.gmra.mxu1 %vm635_vm12, %v1394_v0 }
0x17a5   :  { %v1467_v27 = vpop.f32.mrf.mxu3 }
0x17a6   :  { %v1470_v56 = vperm.slane %v1467_v27, 0 }
0x17a8   :  { %v1472_v1 = vadd.f32 %v1470_v56, %v2292_v39  ;;  %v1471_v2 = vadd.f32 %v1470_v56, %v2290_v36 }
0x17aa   :  { %1873 = vtanh.f32 %v1472_v1 }
0x17ab   :  { %1875 = vtanh.f32 %v1471_v2 }
0x17b0   :  { %v1874_v3 = vpop.eup %1873 }
0x17b1   :  { %1774 = vmatpush.xpose.msk.msrb.mxu3 %vm478_vm3, %v1874_v3  ;;  %v1876_v4 = vpop.eup %1875 }
0x17b5   :  { %1775 = vmatpush.xpose.msk.msrb.mxu3 %vm478_vm3, %v1876_v4 }
0x17b8   :  { %1776 = vmatmul.msk.f32.vlgmr.msrb.gmra.mxu3 %vm478_vm3, %v1893_v30 }
0x17b9   :  { %1542 = vmatpush.msra.mxu3 %v2278_v28 }
0x17ba   :  { %v1407_v39 = vpop.f32.mrf.mxu1 }
0x17bb   :  { %1543 = vmatpush.msra.mxu3 %v2275_v25  ;;  %v1408_v36 = vadd.f32 %v1407_v39, %v2454_v12 }
0x17bd   :  { %1411 = vst [vmem:[%s2692_s14 + $0x3] sm:$0x1] %v1408_v36  ;;  %v1412_v5 = vsel %vm754_vm1, %v1408_v36, -inf }
0x17be   :  { %1413 = vmax.xlane.f32.xlu0 %v1412_v5 }
0x17c2   :  { %v1409_v57 = vpop.f32.mrf.mxu1 }
0x1831   :  { %v1414_v28 = vpop.xlane.xlu0 %1413 }
0x1832   :  { %vm1415_vm0 = vcmp.ge.f32.partialorder %v1408_v36, %v1414_v28 }
0x1833   :  { %v1416_v6 = vsel %vm1415_vm0, %v2356_v10, 128 }
0x1834   :  { %v1417_v32 = vsel %vm754_vm1, %v1416_v6, 2147483647 }
0x1835   :  { %v1419_v58 = vshra.s32 %v1417_v32, 16  ;;  %v1418_v45 = vand.u32 65535, %v1417_v32 }
0x1837   :  { %v1421_v12 = vcvt.s32.f32 %v1419_v58  ;;  %v1420_v46 = vcvt.s32.f32 %v1418_v45 }
0x183b   :  { %v1498_v8 = vpop.f32.mrf.mxu3 }
0x183c   :  { %v1501_v25 = vsel %vm536_vm4, %v1498_v8, -inf }
0x183d   :  { %1502 = vmax.xlane.f32.xlu1 %v1501_v25 }
0x1845   :  { %1422 = vmin.xlane.f32.xlu1 %v1421_v12 }
0x18b0   :  { %v1503_v60 = vpop.xlane.xlu1 %1502 }
0x18b1   :  { %v1504_v33 = vsub.f32 %v1498_v8, %v1503_v60 }
0x18b3   :  { %v1505_v35 = vmul.f32 1.442695, %v1504_v33 }
0x18b5   :  { %1877 = vpow2.f32 %v1505_v35 }
0x18b8   :  { %v1423_v42 = vpop.xlane.xlu1 %1422 }
0x18b9   :  { %vm1424_vm3 = vcmp.eq.f32.partialorder %v1421_v12, %v1423_v42  ;;  %v1429_v7 = vcvt.f32.s32 %v1423_v42 }
0x18ba   :  { %v1425_v48 = vsel %vm1424_vm3, %v1420_v46, inf }
0x18bb   :  { %v1878_v38 = vpop.eup %1877  ;;  %v1430_v43 = vshll.u32 %v1429_v7, 16 }
0x18bc   :  { %v1507_v41 = vsel %vm536_vm4, %v1878_v38, 0.0 }
0x18bd   :  { %1508 = vadd.xlane.f32.xlu2 %v1507_v41 }
0x18c5   :  { %1426 = vmin.xlane.f32.xlu2 %v1425_v48 }
0x1930   :  { %v1509_v40 = vpop.xlane.xlu2 %1508 }
0x1931   :  { %1879 = vrcp.f32 %v1509_v40  ;;  %v1521_v62 = vand.u32 2147483648, %v1509_v40  ;;  %v1519_v51 = vand.u32 2147483647, %v1509_v40  ;;  %vm1515_vm2 = vweird.f32 %v1509_v40 }
0x1933   :  { %v1522_v37 = vor.u32 1.1754944e-38, %v1521_v62  ;;  %vm1520_vm4 = vcmp.eq.f32.partialorder %v1519_v51, 8.507059e+37 }
0x1937   :  { %v1880_v55 = vpop.eup %1879 }
0x1938   :  { %v1511_v31 = vmul.f32 %v1880_v55, %v1509_v40  ;;  %vm1516_vm1 = vweird.f32 %v1880_v55  ;;  %v1427_v49 = vpop.xlane.xlu2 %1426 }
0x1939   :  { %vm1517_vm5 = vmor %vm1515_vm2, %vm1516_vm1  ;;  %v1428_v9 = vcvt.f32.s32 %v1427_v49 }
0x193a   :  { %v1512_v61 = vsub.f32 1.0, %v1511_v31 }
0x193b   :  { %v1431_v47 = vadd.s32 %v1430_v43, %v1428_v9 }
0x193c   :  { %v1513_v50 = vmul.f32 %v1880_v55, %v1512_v61 }
0x193d   :  { %vm1432_vm6 = vcmp.eq.s32.totalorder %v2356_v10, %v1431_v47  ;;  %v1894_v10 = vld [vmem:[%s2689_s11] sm:$0x1] }
0x193e   :  { %v1514_v63 = vadd.f32 %v1880_v55, %v1513_v50  ;;  %v1769_v16 = vsel %vm1432_vm6, 1.0, %v1924_v22 }
0x193f   :  { %v1445_v15 = vsel %vm1444_vm8, %v1771_v14, %v1769_v16 }
0x1940   :  { %v1518_v53 = vsel %vm1517_vm5, %v1880_v55, %v1514_v63 }
0x1941   :  { %v1523_v54 = vsel %vm1520_vm4, %v1522_v37, %v1518_v53 }
0x1942   :  { %v1524_v34 = vmul.f32 %v1878_v38, %v1523_v54 }
0x1944   :  { %1777 = vmatmul.msk.f32.vlgmr.msra.gmra.mxu3 %vm561_vm9, %v1524_v34 }
0x19c7   :  { %v1545_v29 = vpop.f32.mrf.mxu3 }
0x19c8   :  { %1549 = vrot.lane.b32.xlu0 %v1545_v29, %s1925_s22 }
0x1a3a   :  { %v1550_v52 = vpop.permute.xlu0 %1549 }
0x1a3b   :  { %v1552_v17 = vsel %vm561_vm9, %v1445_v15, %v1550_v52 }
0x1a3c   :  { %v1553_v18 = vsel %vm590_vm11, %v1552_v17, %v2629_v26 }
0x1a3d   :  { %v1554_v19 = vpack.c.bf16 %v1553_v18, %v1553_v18 }
0x1a3f   :  { %1778 = vmatmul.msk.bf16.vlgmr.msra.gmra.mxu2 %vm635_vm12, %v1554_v19 }
0x1ac2   :  { %v1567_v21 = vpop.f32.mrf.mxu2 }
0x1ac3   :  { %v1568_v23 = vadd.f32 %v1894_v10, %v1567_v21 }
0x1ac5   :  { %1881 = vtanh.f32 %v1568_v23  ;;  %v1779_v59 = vmul.f32 -1.442695, %v1568_v23 }
0x1ac7   :  { %1883 = vpow2.f32 %v1779_v59 }
0x1aca   :  { %v1569_v24 = vpop.f32.mrf.mxu2 }
0x1acb   :  { %v1882_v22 = vpop.eup %1881 }
0x1acc   :  { %1593 = vrot.lane.b32.xlu1 %v1882_v22, %s1926_s25 }
0x1acd   :  { %v1884_v44 = vpop.eup %1883 }
0x1ace   :  { %v1574_v0 = vadd.f32 1.0, %v1884_v44 }
0x1ad0   :  { %1885 = vrcp.f32 %v1574_v0  ;;  %v1586_v3 = vand.u32 2147483648, %v1574_v0  ;;  %vm1580_vm10 = vweird.f32 %v1574_v0  ;;  %v1584_v4 = vand.u32 2147483647, %v1574_v0 }
0x1ad2   :  { %v1587_v39 = vor.u32 1.1754944e-38, %v1586_v3  ;;  %vm1585_vm14 = vcmp.eq.f32.partialorder %v1584_v4, 8.507059e+37 }
0x1ad6   :  { %v1886_v26 = vpop.eup %1885 }
0x1ad7   :  { %v1576_v27 = vmul.f32 %v1886_v26, %v1574_v0  ;;  %vm1581_vm9 = vweird.f32 %v1886_v26 }
0x1ad8   :  { %vm1582_vm13 = vmor %vm1580_vm10, %vm1581_vm9 }
0x1ad9   :  { %v1577_v56 = vsub.f32 1.0, %v1576_v27 }
0x1adb   :  { %v1578_v1 = vmul.f32 %v1886_v26, %v1577_v56 }
0x1add   :  { %v1579_v2 = vadd.f32 %v1886_v26, %v1578_v1 }
0x1adf   :  { %v1583_v30 = vsel %vm1582_vm13, %v1886_v26, %v1579_v2 }
0x1ae0   :  { %v1588_v5 = vsel %vm1585_vm14, %v1587_v39, %v1583_v30 }
0x1ae1   :  { %v1591_v28 = vmul.f32 %v1588_v5, %v2622_v20  ;;  %v1895_v20 = vld [vmem:[%s2691_s13] sm:$0x1] }
0x1b3e   :  { %v1594_v36 = vpop.permute.xlu1 %1593 }
0x1b3f   :  { %v1596_v57 = vmul.f32 %v1594_v36, %v1588_v5 }
0x1b41   :  { %1598 = vrot.lane.b32.xlu2 %v1596_v57, %s1927_s26 }
0x1b9b   :  { %v1599_v6 = vpop.permute.xlu2 %1598 }
0x1b9c   :  { %v1601_v8 = vadd.f32 %v1599_v6, %v1591_v28 }
0x1b9e   :  { %1887 = vtanh.f32 %v1601_v8 }
0x1ba4   :  { %v1888_v32 = vpop.eup %1887 }
0x1ba5   :  { %1604 = vrot.lane.b32.xlu0 %v1888_v32, %s1926_s25 }
0x1c17   :  { %v1605_v25 = vpop.permute.xlu0 %1604 }
0x1c18   :  { %v1607_v58 = vmul.f32 %v1605_v25, %v1588_v5 }
0x1c1a   :  { %1609 = vrot.lane.b32.xlu0 %v1607_v58, %s1928_s19 }
0x1c8c   :  { %v1610_v12 = vpop.permute.xlu0 %1609 }
0x1c8d   :  { %v1612_v60 = vsel %vm590_vm11, %v1552_v17, %v1610_v12 }
0x1c8e   :  { %v1613_v33 = vpack.c.bf16 %v1612_v60, %v1612_v60 }
0x1c90   :  { %1780 = vmatmul.msk.bf16.vlgmr.msra.gmra.mxu1 %vm635_vm12, %v1613_v33 }
0x1d0d   :  { %v1626_v35 = vpop.f32.mrf.mxu1 }
0x1d0e   :  { %v1627_v38 = vadd.f32 %v1895_v20, %v1626_v35 }
0x1d10   :  { %1630 = vst [vmem:[%s2692_s14 + $0x4] sm:$0x1] %v1627_v38 }
0x1d15   :  { %v1628_v41 = vpop.f32.mrf.mxu1 }

</bundles_post_ra>
